<compile_context>
chip_gen: v6e
topology: v6e:2x2x1
jax: 0.10.0
libtpu: 0.0.40
codegen_flags: <defaults>
</compile_context>

<pallas_src>
import functools

import jax
import jax.numpy as jnp
from jax.experimental import pallas as pl
from jax.experimental.pallas import tpu as pltpu


def _round_up(x, m):
    return (x + m - 1) // m * m


def _padded_hidden(hidden):
    # Lane-dense padding. 128 = lane width; for hidden > 128 round up to a multiple of 256
    # so the last K/N pass of the 2x256x256 MXU (v6e/v7x) is not half idle (same number of
    # passes -> free).  hidden <= 128 stays at 128 so tiny models aren't blown up in FLOPs.
    hp = _round_up(hidden, 128)
    if hp > 128:
        hp = _round_up(hp, 256)
    return hp


def _highway_kernel(w_ref, b_ref, x_ref, out_ref, *, num_layers, hp):
    """Full highway stack on one (row_tile, hp) tile of rows.

    w_ref  : (L, hp, 2*hp) packed weights, columns [:hp] = A, [hp:] = B  (y = x @ W)
    b_ref  : (L, 1, 2*hp)  f32 packed biases, same column layout
    x_ref  : (row_tile, hp) activations (param dtype, e.g. bf16)
    out_ref: (row_tile, hp) output (original input dtype)
    """
    res = x_ref[...].astype(jnp.float32)              # residual / blend stays in f32
    for layer in range(num_layers):                   # num_layers is small -> static unroll
        x_in = res.astype(w_ref.dtype)                # bf16 MXU operands on the fast path
        # ONE fused MXU matmul per layer: (rows, hp) @ (hp, 2*hp), f32 accumulation.
        proj = jnp.dot(x_in, w_ref[layer], preferred_element_type=jnp.float32)
        proj = proj + b_ref[layer]                    # (1, 2*hp) broadcast
        lin_a = proj[:, :hp]                          # 128-lane aligned slice: free
        gate = jax.nn.sigmoid(proj[:, hp:])           # EUP; stays f32
        res = gate * res + (1.0 - gate) * jnp.maximum(lin_a, 0.0)
    out_ref[...] = res.astype(out_ref.dtype)


def pack_highway_params(wa, ba, wb, bb, *, param_dtype=jnp.bfloat16):
    """Pack per-layer A/B params once (hoisted out of the per-call path).

    wa, wb : (L, hidden, hidden) laid out so A_l(v) = v @ wa[l] + ba[l]
             (i.e. the transpose of the PyTorch nn.Linear weight).
    ba, bb : (L, hidden)
    Returns:
      w_packed : (L, hp, 2*hp) param_dtype, columns [:hp] = A, [hp:] = B
      b_packed : (L, 1, 2*hp)  float32
    All padding is exactly 0 (see invariant in the module docstring) - keep it that way.
    """
    num_layers, hidden, _ = wa.shape
    hp = _padded_hidden(hidden)
    wpad = ((0, 0), (0, hp - hidden), (0, hp - hidden))
    bpad = ((0, 0), (0, hp - hidden))
    w = jnp.concatenate([jnp.pad(wa, wpad), jnp.pad(wb, wpad)], axis=-1)   # (L, hp, 2*hp)
    b = jnp.concatenate([jnp.pad(ba, bpad), jnp.pad(bb, bpad)], axis=-1)   # (L, 2*hp)
    return w.astype(param_dtype), b[:, None, :].astype(jnp.float32)


def highway_forward_packed(x, w_packed, b_packed, *, row_tile=256,
                           single_buffer_params=True):
    """Highway forward with pre-packed parameters.  x: (..., hidden)."""
    orig_shape = x.shape
    hidden = orig_shape[-1]
    num_layers, hp, hp2 = w_packed.shape
    assert hp2 == 2 * hp and hp >= hidden

    n = 1
    for d in orig_shape[:-1]:
        n *= int(d)

    # Row tile: multiple of 128 (floor 128), never bigger than the padded row count, and
    # small enough that the "parallel" grid keeps >= 2 steps when possible (v7x megacore).
    row_tile = max(128, (int(row_tile) // 128) * 128)
    n128 = _round_up(max(n, 1), 128)
    row_tile = min(row_tile, n128)
    if row_tile > 128 and n128 // row_tile < 2:
        row_tile = max(128, ((n128 // 2) // 128) * 128)
    n_pad = _round_up(max(n, 1), row_tile)

    x_flat = x.reshape(n, hidden).astype(w_packed.dtype)
    x_pad = jnp.pad(x_flat, ((0, n_pad - n), (0, hp - hidden)))   # lane-dense (n_pad, hp)
    out_dtype = x.dtype                                           # emit in input dtype

    # Per-TensorCore VMEM budget: weights (x2 if double-buffered), biases, double-buffered
    # activation in/out tiles, plus slack for in-kernel f32 temporaries / spills.
    w_bufs = 1 if single_buffer_params else 2
    need = (w_bufs * w_packed.size * w_packed.dtype.itemsize
            + 2 * b_packed.size * b_packed.dtype.itemsize
            + 2 * row_tile * hp * x_pad.dtype.itemsize
            + 2 * row_tile * hp * jnp.dtype(out_dtype).itemsize)
    vmem_limit = int(1.25 * need) + (8 << 20)
    # Floor above v5e's 16 MiB default scoped limit; cap at v7x's 64 MiB per-TC physical.
    vmem_limit = min(max(vmem_limit, 32 << 20), 64 << 20)

    # Weights/biases are grid-invariant: request a single resident buffer (no re-fetch,
    # no second copy).  Falls back to default double buffering if unsupported (see __main__).
    param_mode = dict(pipeline_mode=pl.Buffered(1)) if single_buffer_params else {}
    w_spec = pl.BlockSpec((num_layers, hp, 2 * hp), lambda i: (0, 0, 0), **param_mode)
    b_spec = pl.BlockSpec((num_layers, 1, 2 * hp), lambda i: (0, 0, 0), **param_mode)

    kernel = functools.partial(_highway_kernel, num_layers=num_layers, hp=hp)
    out = pl.pallas_call(
        kernel,
        out_shape=jax.ShapeDtypeStruct((n_pad, hp), out_dtype),
        grid_spec=pltpu.PrefetchScalarGridSpec(
            num_scalar_prefetch=0,
            grid=(n_pad // row_tile,),
            in_specs=[
                w_spec,                                              # packed weights
                b_spec,                                              # packed biases
                pl.BlockSpec((row_tile, hp), lambda i: (i, 0)),      # activations
            ],
            out_specs=pl.BlockSpec((row_tile, hp), lambda i: (i, 0)),
        ),
        compiler_params=pltpu.CompilerParams(
            dimension_semantics=("parallel",),       # independent row tiles -> 2-TC split
            vmem_limit_bytes=vmem_limit),
    )(w_packed, b_packed, x_pad)

    return out[:n, :hidden].reshape(orig_shape)


def highway_forward(x, wa, ba, wb, bb, *, row_tile=256, param_dtype=jnp.bfloat16,
                    single_buffer_params=True):
    """Convenience wrapper (packs per call).  Prefer pack_highway_params once +
    highway_forward_packed under jit for production use."""
    w, b = pack_highway_params(wa, ba, wb, bb, param_dtype=param_dtype)
    return highway_forward_packed(x, w, b, row_tile=row_tile,
                                  single_buffer_params=single_buffer_params)


def reference_forward(x, wa, ba, wb, bb):
    """Pure-JAX reference mirroring the PyTorch Highway.forward semantics."""
    res = x
    for layer in range(wa.shape[0]):
        gate = jax.nn.sigmoid(res @ wb[layer] + bb[layer])
        lin_a = res @ wa[layer] + ba[layer]
        res = gate * res + (1.0 - gate) * jnp.maximum(lin_a, 0.0)
    return res


if __name__ == "__main__":
    hidden_size = 32
    num_layers = 2
    batch, seq = 2, 8

    key = jax.random.PRNGKey(0)
    kx, kwa, kba, kwb = jax.random.split(key, 4)
    x = jax.random.normal(kx, (batch, seq, hidden_size), jnp.float32)
    wa = 0.1 * jax.random.normal(kwa, (num_layers, hidden_size, hidden_size), jnp.float32)
    ba = 0.1 * jax.random.normal(kba, (num_layers, hidden_size), jnp.float32)
    wb = 0.1 * jax.random.normal(kwb, (num_layers, hidden_size, hidden_size), jnp.float32)
    bb = jnp.ones((num_layers, hidden_size), jnp.float32)   # linear_B bias.data.fill_(1.0)

    ref = reference_forward(x, wa, ba, wb, bb)

    # Parameters are packed ONCE outside the jitted forward (hoisted pad/concat/cast).
    w_f32, b_f32 = pack_highway_params(wa, ba, wb, bb, param_dtype=jnp.float32)
    w_bf16, b_bf16 = pack_highway_params(wa, ba, wb, bb, param_dtype=jnp.bfloat16)

    # Prefer single-buffered grid-invariant parameter blocks; if this jax build rejects
    # pl.Buffered(1) for pallas_call pipelining, fall back to default double buffering.
    single_buf = True
    run_f32 = jax.jit(functools.partial(highway_forward_packed, row_tile=128,
                                        single_buffer_params=True))
    try:
        out = jax.block_until_ready(run_f32(x, w_f32, b_f32))
    except Exception:
        single_buf = False
        run_f32 = jax.jit(functools.partial(highway_forward_packed, row_tile=128,
                                            single_buffer_params=False))
        out = jax.block_until_ready(run_f32(x, w_f32, b_f32))

    assert out.shape == (batch, seq, hidden_size)
    assert out.dtype == x.dtype
    assert jnp.allclose(out, ref, atol=1e-5, rtol=1e-5), "f32 mismatch vs reference"

    # Default fast path: bf16 operands, f32 MXU accumulation + f32 highway blend.
    run_bf16 = jax.jit(functools.partial(highway_forward_packed, row_tile=256,
                                         single_buffer_params=single_buf))
    out_bf16 = jax.block_until_ready(run_bf16(x, w_bf16, b_bf16))
    assert out_bf16.shape == (batch, seq, hidden_size)
    assert jnp.max(jnp.abs(out_bf16.astype(jnp.float32) - ref)) < 0.1, "bf16 mismatch"

    print("KERNEL_OK")
</pallas_src>

<mosaic_0001>
module attributes {stable_mosaic.version = 11 : i64} {
  func.func @_highway_kernel(%arg0: i32, %arg1: memref<2x128x256xf32, #tpu.memory_space<vmem>>, %arg2: memref<2x1x256xf32, #tpu.memory_space<vmem>>, %arg3: memref<128x128xf32, #tpu.memory_space<vmem>>, %arg4: memref<128x128xf32, #tpu.memory_space<vmem>>) attributes {dimension_semantics = [#tpu.dimension_semantics<parallel>], iteration_bounds = array<i64: 1>, scalar_prefetch = 0 : i64, scratch_operands = 0 : i64, tpu.core_type = #tpu.core_type<tc>, window_params = [{pipeline_mode = #tpu.pipeline_mode<synchronous>, transform_indices = @transform_0, window_bounds = array<i64: 2, 128, 256>}, {pipeline_mode = #tpu.pipeline_mode<synchronous>, transform_indices = @transform_1, window_bounds = array<i64: 2, 1, 256>}, {transform_indices = @transform_2, window_bounds = array<i64: 128, 128>}, {transform_indices = @transform_3, window_bounds = array<i64: 128, 128>}]} {
    %c0 = arith.constant 0 : index
    %c0_0 = arith.constant 0 : index
    %0 = vector.load %arg3[%c0, %c0_0] : memref<128x128xf32, #tpu.memory_space<vmem>>, vector<128x128xf32>
    %c0_1 = arith.constant 0 : index
    %c0_2 = arith.constant 0 : index
    %c0_3 = arith.constant 0 : index
    %1 = vector.load %arg1[%c0_1, %c0_2, %c0_3] : memref<2x128x256xf32, #tpu.memory_space<vmem>>, vector<1x128x256xf32>
    %2 = vector.shape_cast %1 : vector<1x128x256xf32> to vector<128x256xf32>
    %cst = arith.constant dense<0.000000e+00> : vector<128x256xf32>
    %3 = tpu.matmul %0, %2, %cst {dimension_numbers = #tpu.dot_dimension_numbers<[1], [0], [0], [1], [0, 0, 1, 1], [], []>} : vector<128x128xf32>, vector<128x256xf32>, vector<128x256xf32> -> vector<128x256xf32>
    %c0_4 = arith.constant 0 : index
    %c0_5 = arith.constant 0 : index
    %c0_6 = arith.constant 0 : index
    %4 = vector.load %arg2[%c0_4, %c0_5, %c0_6] : memref<2x1x256xf32, #tpu.memory_space<vmem>>, vector<1x1x256xf32>
    %5 = vector.shape_cast %4 : vector<1x1x256xf32> to vector<1x256xf32>
    %6 = vector.broadcast %5 : vector<1x256xf32> to vector<128x256xf32>
    %7 = arith.addf %3, %6 : vector<128x256xf32>
    %8 = vector.extract_strided_slice %7 {offsets = [0, 0], sizes = [128, 128], strides = [1, 1]} : vector<128x256xf32> to vector<128x128xf32>
    %9 = vector.extract_strided_slice %7 {offsets = [0, 128], sizes = [128, 128], strides = [1, 1]} : vector<128x256xf32> to vector<128x128xf32>
    %10 = arith.negf %9 : vector<128x128xf32>
    %11 = math.exp %10 : vector<128x128xf32>
    %cst_7 = arith.constant 1.000000e+00 : f32
    %12 = vector.broadcast %cst_7 : f32 to vector<128x128xf32>
    %13 = arith.addf %12, %11 : vector<128x128xf32>
    %14 = arith.divf %12, %13 : vector<128x128xf32>
    %15 = arith.mulf %14, %0 : vector<128x128xf32>
    %cst_8 = arith.constant 1.000000e+00 : f32
    %16 = vector.broadcast %cst_8 : f32 to vector<128x128xf32>
    %17 = arith.subf %16, %14 : vector<128x128xf32>
    %cst_9 = arith.constant 0.000000e+00 : f32
    %18 = vector.broadcast %cst_9 : f32 to vector<128x128xf32>
    %19 = arith.maximumf %8, %18 : vector<128x128xf32>
    %20 = arith.mulf %17, %19 : vector<128x128xf32>
    %21 = arith.addf %15, %20 : vector<128x128xf32>
    %c1 = arith.constant 1 : index
    %c0_10 = arith.constant 0 : index
    %c0_11 = arith.constant 0 : index
    %22 = vector.load %arg1[%c1, %c0_10, %c0_11] : memref<2x128x256xf32, #tpu.memory_space<vmem>>, vector<1x128x256xf32>
    %23 = vector.shape_cast %22 : vector<1x128x256xf32> to vector<128x256xf32>
    %cst_12 = arith.constant dense<0.000000e+00> : vector<128x256xf32>
    %24 = tpu.matmul %21, %23, %cst_12 {dimension_numbers = #tpu.dot_dimension_numbers<[1], [0], [0], [1], [0, 0, 1, 1], [], []>} : vector<128x128xf32>, vector<128x256xf32>, vector<128x256xf32> -> vector<128x256xf32>
    %c1_13 = arith.constant 1 : index
    %c0_14 = arith.constant 0 : index
    %c0_15 = arith.constant 0 : index
    %25 = vector.load %arg2[%c1_13, %c0_14, %c0_15] : memref<2x1x256xf32, #tpu.memory_space<vmem>>, vector<1x1x256xf32>
    %26 = vector.shape_cast %25 : vector<1x1x256xf32> to vector<1x256xf32>
    %27 = vector.broadcast %26 : vector<1x256xf32> to vector<128x256xf32>
    %28 = arith.addf %24, %27 : vector<128x256xf32>
    %29 = vector.extract_strided_slice %28 {offsets = [0, 0], sizes = [128, 128], strides = [1, 1]} : vector<128x256xf32> to vector<128x128xf32>
    %30 = vector.extract_strided_slice %28 {offsets = [0, 128], sizes = [128, 128], strides = [1, 1]} : vector<128x256xf32> to vector<128x128xf32>
    %31 = arith.negf %30 : vector<128x128xf32>
    %32 = math.exp %31 : vector<128x128xf32>
    %cst_16 = arith.constant 1.000000e+00 : f32
    %33 = vector.broadcast %cst_16 : f32 to vector<128x128xf32>
    %34 = arith.addf %33, %32 : vector<128x128xf32>
    %35 = arith.divf %33, %34 : vector<128x128xf32>
    %36 = arith.mulf %35, %21 : vector<128x128xf32>
    %cst_17 = arith.constant 1.000000e+00 : f32
    %37 = vector.broadcast %cst_17 : f32 to vector<128x128xf32>
    %38 = arith.subf %37, %35 : vector<128x128xf32>
    %cst_18 = arith.constant 0.000000e+00 : f32
    %39 = vector.broadcast %cst_18 : f32 to vector<128x128xf32>
    %40 = arith.maximumf %29, %39 : vector<128x128xf32>
    %41 = arith.mulf %38, %40 : vector<128x128xf32>
    %42 = arith.addf %36, %41 : vector<128x128xf32>
    %c0_19 = arith.constant 0 : index
    %c0_20 = arith.constant 0 : index
    %43 = vector.load %arg4[%c0_19, %c0_20] : memref<128x128xf32, #tpu.memory_space<vmem>>, vector<128x128xf32>
    tpu.vector_store %arg4[%c0_19, %c0_20], %42 {strides = array<i32>} : memref<128x128xf32, #tpu.memory_space<vmem>>, vector<128x128xf32>,
    return
  }
  func.func @transform_0(%arg0: i32) -> (i32, i32, i32) {
    %c0_i32 = arith.constant 0 : i32
    %c0_i32_0 = arith.constant 0 : i32
    %c0_i32_1 = arith.constant 0 : i32
    %c0_i32_2 = arith.constant 0 : i32
    return %c0_i32, %c0_i32_0, %c0_i32_1 : i32, i32, i32
  }
  func.func @transform_1(%arg0: i32) -> (i32, i32, i32) {
    %c0_i32 = arith.constant 0 : i32
    %c0_i32_0 = arith.constant 0 : i32
    %c0_i32_1 = arith.constant 0 : i32
    %c0_i32_2 = arith.constant 0 : i32
    return %c0_i32, %c0_i32_0, %c0_i32_1 : i32, i32, i32
  }
  func.func @transform_2(%arg0: i32) -> (i32, i32) {
    %c0_i32 = arith.constant 0 : i32
    %c0_i32_0 = arith.constant 0 : i32
    return %arg0, %c0_i32 : i32, i32
  }
  func.func @transform_3(%arg0: i32) -> (i32, i32) {
    %c0_i32 = arith.constant 0 : i32
    %c0_i32_0 = arith.constant 0 : i32
    return %arg0, %c0_i32 : i32, i32
  }
}

module attributes {stable_mosaic.version = 11 : i64} {
  func.func @_highway_kernel(%arg0: i32, %arg1: memref<2x128x256xf32, #tpu.memory_space<vmem>>, %arg2: memref<2x1x256xf32, #tpu.memory_space<vmem>>, %arg3: memref<128x128xf32, #tpu.memory_space<vmem>>, %arg4: memref<128x128xf32, #tpu.memory_space<vmem>>) attributes {dimension_semantics = [#tpu.dimension_semantics<parallel>], iteration_bounds = array<i64: 1>, scalar_prefetch = 0 : i64, scratch_operands = 0 : i64, tpu.core_type = #tpu.core_type<tc>, window_params = [{pipeline_mode = #tpu.pipeline_mode<synchronous>, transform_indices = @transform_0, window_bounds = array<i64: 2, 128, 256>}, {pipeline_mode = #tpu.pipeline_mode<synchronous>, transform_indices = @transform_1, window_bounds = array<i64: 2, 1, 256>}, {transform_indices = @transform_2, window_bounds = array<i64: 128, 128>}, {transform_indices = @transform_3, window_bounds = array<i64: 128, 128>}]} {
    %c0 = arith.constant 0 : index
    %c0_0 = arith.constant 0 : index
    %0 = vector.load %arg3[%c0, %c0_0] : memref<128x128xf32, #tpu.memory_space<vmem>>, vector<128x128xf32>
    %c0_1 = arith.constant 0 : index
    %c0_2 = arith.constant 0 : index
    %c0_3 = arith.constant 0 : index
    %1 = vector.load %arg1[%c0_1, %c0_2, %c0_3] : memref<2x128x256xf32, #tpu.memory_space<vmem>>, vector<1x128x256xf32>
    %2 = vector.shape_cast %1 : vector<1x128x256xf32> to vector<128x256xf32>
    %cst = arith.constant dense<0.000000e+00> : vector<128x256xf32>
    %3 = tpu.matmul %0, %2, %cst {dimension_numbers = #tpu.dot_dimension_numbers<[1], [0], [0], [1], [0, 0, 1, 1], [], []>} : vector<128x128xf32>, vector<128x256xf32>, vector<128x256xf32> -> vector<128x256xf32>
    %c0_4 = arith.constant 0 : index
    %c0_5 = arith.constant 0 : index
    %c0_6 = arith.constant 0 : index
    %4 = vector.load %arg2[%c0_4, %c0_5, %c0_6] : memref<2x1x256xf32, #tpu.memory_space<vmem>>, vector<1x1x256xf32>
    %5 = vector.shape_cast %4 : vector<1x1x256xf32> to vector<1x256xf32>
    %6 = vector.broadcast %5 : vector<1x256xf32> to vector<128x256xf32>
    %7 = arith.addf %3, %6 : vector<128x256xf32>
    %8 = vector.extract_strided_slice %7 {offsets = [0, 0], sizes = [128, 128], strides = [1, 1]} : vector<128x256xf32> to vector<128x128xf32>
    %9 = vector.extract_strided_slice %7 {offsets = [0, 128], sizes = [128, 128], strides = [1, 1]} : vector<128x256xf32> to vector<128x128xf32>
    %10 = arith.negf %9 : vector<128x128xf32>
    %11 = math.exp %10 : vector<128x128xf32>
    %cst_7 = arith.constant 1.000000e+00 : f32
    %12 = vector.broadcast %cst_7 : f32 to vector<128x128xf32>
    %13 = arith.addf %12, %11 : vector<128x128xf32>
    %14 = arith.divf %12, %13 : vector<128x128xf32>
    %15 = arith.mulf %14, %0 : vector<128x128xf32>
    %cst_8 = arith.constant 1.000000e+00 : f32
    %16 = vector.broadcast %cst_8 : f32 to vector<128x128xf32>
    %17 = arith.subf %16, %14 : vector<128x128xf32>
    %cst_9 = arith.constant 0.000000e+00 : f32
    %18 = vector.broadcast %cst_9 : f32 to vector<128x128xf32>
    %19 = arith.maximumf %8, %18 : vector<128x128xf32>
    %20 = arith.mulf %17, %19 : vector<128x128xf32>
    %21 = arith.addf %15, %20 : vector<128x128xf32>
    %c1 = arith.constant 1 : index
    %c0_10 = arith.constant 0 : index
    %c0_11 = arith.constant 0 : index
    %22 = vector.load %arg1[%c1, %c0_10, %c0_11] : memref<2x128x256xf32, #tpu.memory_space<vmem>>, vector<1x128x256xf32>
    %23 = vector.shape_cast %22 : vector<1x128x256xf32> to vector<128x256xf32>
    %cst_12 = arith.constant dense<0.000000e+00> : vector<128x256xf32>
    %24 = tpu.matmul %21, %23, %cst_12 {dimension_numbers = #tpu.dot_dimension_numbers<[1], [0], [0], [1], [0, 0, 1, 1], [], []>} : vector<128x128xf32>, vector<128x256xf32>, vector<128x256xf32> -> vector<128x256xf32>
    %c1_13 = arith.constant 1 : index
    %c0_14 = arith.constant 0 : index
    %c0_15 = arith.constant 0 : index
    %25 = vector.load %arg2[%c1_13, %c0_14, %c0_15] : memref<2x1x256xf32, #tpu.memory_space<vmem>>, vector<1x1x256xf32>
    %26 = vector.shape_cast %25 : vector<1x1x256xf32> to vector<1x256xf32>
    %27 = vector.broadcast %26 : vector<1x256xf32> to vector<128x256xf32>
    %28 = arith.addf %24, %27 : vector<128x256xf32>
    %29 = vector.extract_strided_slice %28 {offsets = [0, 0], sizes = [128, 128], strides = [1, 1]} : vector<128x256xf32> to vector<128x128xf32>
    %30 = vector.extract_strided_slice %28 {offsets = [0, 128], sizes = [128, 128], strides = [1, 1]} : vector<128x256xf32> to vector<128x128xf32>
    %31 = arith.negf %30 : vector<128x128xf32>
    %32 = math.exp %31 : vector<128x128xf32>
    %cst_16 = arith.constant 1.000000e+00 : f32
    %33 = vector.broadcast %cst_16 : f32 to vector<128x128xf32>
    %34 = arith.addf %33, %32 : vector<128x128xf32>
    %35 = arith.divf %33, %34 : vector<128x128xf32>
    %36 = arith.mulf %35, %21 : vector<128x128xf32>
    %cst_17 = arith.constant 1.000000e+00 : f32
    %37 = vector.broadcast %cst_17 : f32 to vector<128x128xf32>
    %38 = arith.subf %37, %35 : vector<128x128xf32>
    %cst_18 = arith.constant 0.000000e+00 : f32
    %39 = vector.broadcast %cst_18 : f32 to vector<128x128xf32>
    %40 = arith.maximumf %29, %39 : vector<128x128xf32>
    %41 = arith.mulf %38, %40 : vector<128x128xf32>
    %42 = arith.addf %36, %41 : vector<128x128xf32>
    %c0_19 = arith.constant 0 : index
    %c0_20 = arith.constant 0 : index
    %43 = vector.load %arg4[%c0_19, %c0_20] : memref<128x128xf32, #tpu.memory_space<vmem>>, vector<128x128xf32>
    tpu.vector_store %arg4[%c0_19, %c0_20], %42 {strides = array<i32>} : memref<128x128xf32, #tpu.memory_space<vmem>>, vector<128x128xf32>,
    return
  }
  func.func @transform_0(%arg0: i32) -> (i32, i32, i32) {
    %c0_i32 = arith.constant 0 : i32
    %c0_i32_0 = arith.constant 0 : i32
    %c0_i32_1 = arith.constant 0 : i32
    %c0_i32_2 = arith.constant 0 : i32
    return %c0_i32, %c0_i32_0, %c0_i32_1 : i32, i32, i32
  }
  func.func @transform_1(%arg0: i32) -> (i32, i32, i32) {
    %c0_i32 = arith.constant 0 : i32
    %c0_i32_0 = arith.constant 0 : i32
    %c0_i32_1 = arith.constant 0 : i32
    %c0_i32_2 = arith.constant 0 : i32
    return %c0_i32, %c0_i32_0, %c0_i32_1 : i32, i32, i32
  }
  func.func @transform_2(%arg0: i32) -> (i32, i32) {
    %c0_i32 = arith.constant 0 : i32
    %c0_i32_0 = arith.constant 0 : i32
    return %arg0, %c0_i32 : i32, i32
  }
  func.func @transform_3(%arg0: i32) -> (i32, i32) {
    %c0_i32 = arith.constant 0 : i32
    %c0_i32_0 = arith.constant 0 : i32
    return %arg0, %c0_i32 : i32, i32
  }
}

</mosaic_0001>

<bundles_post_ra>
// kernel: highway_forward_packed.1
= control target key start
LH: loop header
LB: loop body
LE: loop exit
PB: predicated region body
PF: predicated region fallthrough
CT: control target
= control target key end

     0   :  { %8 = vsyncpa [#allocation3], 0  ;;  %s1016_s12 = smov [#allocation2]   ;;  %s1473_s0 = inlined_call_operand.hbm [shape: f32[2,128,256], index: 0, kind: input, shape index: {}]   ;;  %s1474_s1 = inlined_call_operand.vmem [shape: f32[2,1,256], index: 1, kind: input, shape index: {}]   ;;  %s1475_s2 = inlined_call_operand.vmem [shape: f32[128,128], index: 2, kind: input, shape index: {}]   ;;  %s1476_s3 = inlined_call_operand.vmem [shape: f32[128,128], index: 3, kind: output, shape index: {}]  }
   0x1   :  { %s14_s13 = sshll.u32 %s1016_s12, 4  ;;  %s15_s13 = int_to_ptr.vmem [resolvable:$true] %s14_s13 }
   0x2   :  { %s1002_s14 = scalar_lea.vmem %s15_s13, 8192  ;;  %p1007_p1 = scmp.lt.s32.totalorder %s15_s13, %s15_s13 }
   0x3   :  { %p1003_p0 = scmp.ne.s32.totalorder %s15_s13, %s1002_s14  ;;  %p1008_p2 = scmp.lt.s32.totalorder %s1002_s14, %s1002_s14 }
   0x5   :  { %p1009_p3 = por %p1008_p2, %p1007_p1 }
   0x7   :  { %p1010_p4 = pnand %p1009_p3, %p1003_p0 }
   0x9   :  { %1013 = shalt.err (!%p1010_p4)
}
   0xa   :  { %s1017_s15 = smov 256   ;;  %s1018_s16 = smov 16  }
   0xb   :  { %20 = dma.hbm_to_vmem [thread:$0]  %s1473_s0, 8192, %s15_s13, [#allocation3], %s1017_s15, %s1017_s15, %s1018_s16  }
   0xc   :  { %1014 = dma.done.wait [#allocation3], 8192  }
   0xd   :  { %1015 = vsyncadd [#allocation3], 4294959104  ;;  %v1019_v0 = vmov 0.0   ;;  %v75_v1 = vld [vmem:[#allocation2 + $0xf8] sm:$0xff]  ;;  %v74_v2 = vld [vmem:[#allocation2 + $0xf0] sm:$0xff] }
   0xe   :  { %152 = vmatprep.mubr.f32.mxu0 %v1019_v0  ;;  %535 = vmatprep.mubr.f32.mxu1 %v1019_v0  ;;  %v73_v3 = vld [vmem:[#allocation2 + $0xe8] sm:$0xff]  ;;  %v72_v4 = vld [vmem:[#allocation2 + $0xe0] sm:$0xff]  ;;  %v71_v5 = vld [vmem:[#allocation2 + $0xd8] sm:$0xff] }
   0xf   :  { %88 = vmatprep.subr.mxu0 %v75_v1  ;;  %v70_v6 = vld [vmem:[#allocation2 + $0xd0] sm:$0xff]  ;;  %v69_v7 = vld [vmem:[#allocation2 + $0xc8] sm:$0xff]  ;;  %v68_v8 = vld [vmem:[#allocation2 + $0xc0] sm:$0xff] }
  0x10   :  { %89 = vmatpush1.msra.mxu0 %v74_v2  ;;  %v67_v9 = vld [vmem:[#allocation2 + $0xb8] sm:$0xff]  ;;  %v66_v10 = vld [vmem:[#allocation2 + $0xb0] sm:$0xff]  ;;  %v65_v11 = vld [vmem:[#allocation2 + $0xa8] sm:$0xff] }
  0x11   :  { %90 = vmatprep.subr.mxu0 %v73_v3  ;;  %v64_v12 = vld [vmem:[#allocation2 + $0xa0] sm:$0xff]  ;;  %v63_v13 = vld [vmem:[#allocation2 + $0x98] sm:$0xff]  ;;  %v62_v14 = vld [vmem:[#allocation2 + $0x90] sm:$0xff] }
  0x12   :  { %91 = vmatpush1.msra.mxu0 %v72_v4  ;;  %v61_v15 = vld [vmem:[#allocation2 + $0x88] sm:$0xff]  ;;  %v60_v16 = vld [vmem:[#allocation2 + $0x80] sm:$0xff]  ;;  %v59_v17 = vld [vmem:[#allocation2 + $0x78] sm:$0xff] }
  0x13   :  { %92 = vmatprep.subr.mxu0 %v71_v5  ;;  %v58_v18 = vld [vmem:[#allocation2 + $0x70] sm:$0xff]  ;;  %v57_v19 = vld [vmem:[#allocation2 + $0x68] sm:$0xff]  ;;  %v56_v20 = vld [vmem:[#allocation2 + $0x60] sm:$0xff] }
  0x14   :  { %93 = vmatpush1.msra.mxu0 %v70_v6  ;;  %v55_v21 = vld [vmem:[#allocation2 + $0x58] sm:$0xff]  ;;  %v54_v22 = vld [vmem:[#allocation2 + $0x50] sm:$0xff]  ;;  %v53_v23 = vld [vmem:[#allocation2 + $0x48] sm:$0xff] }
  0x15   :  { %94 = vmatprep.subr.mxu0 %v69_v7  ;;  %v52_v24 = vld [vmem:[#allocation2 + $0x40] sm:$0xff]  ;;  %v51_v25 = vld [vmem:[#allocation2 + $0x38] sm:$0xff]  ;;  %v50_v26 = vld [vmem:[#allocation2 + $0x30] sm:$0xff] }
  0x16   :  { %95 = vmatpush1.msra.mxu0 %v68_v8  ;;  %v49_v27 = vld [vmem:[#allocation2 + $0x28] sm:$0xff]  ;;  %v48_v28 = vld [vmem:[#allocation2 + $0x20] sm:$0xff]  ;;  %v47_v29 = vld [vmem:[#allocation2 + $0x18] sm:$0xff] }
  0x17   :  { %96 = vmatprep.subr.mxu0 %v67_v9  ;;  %v46_v30 = vld [vmem:[#allocation2 + $0x10] sm:$0xff]  ;;  %v45_v31 = vld [vmem:[#allocation2 + $0x8] sm:$0xff]  ;;  %v44_v32 = vld [vmem:[#allocation2] sm:$0xff] }
  0x18   :  { %97 = vmatpush1.msra.mxu0 %v66_v10  ;;  %v1048_v33 = vld [vmem:[%s1475_s2] sm:$0xff]  ;;  %v1055_v34 = vld [vmem:[%s1475_s2 + $0x8] sm:$0xff]  ;;  %v1062_v35 = vld [vmem:[%s1475_s2 + $0x10] sm:$0xff] }
  0x19   :  { %98 = vmatprep.subr.mxu0 %v65_v11  ;;  %v1069_v36 = vld [vmem:[%s1475_s2 + $0x18] sm:$0xff]  ;;  %v1076_v37 = vld [vmem:[%s1475_s2 + $0x20] sm:$0xff]  ;;  %v1083_v38 = vld [vmem:[%s1475_s2 + $0x28] sm:$0xff] }
  0x1a   :  { %99 = vmatpush1.msra.mxu0 %v64_v12  ;;  %v1090_v39 = vld [vmem:[%s1475_s2 + $0x30] sm:$0xff]  ;;  %v1097_v40 = vld [vmem:[%s1475_s2 + $0x38] sm:$0xff]  ;;  %v1104_v41 = vld [vmem:[%s1475_s2 + $0x40] sm:$0xff] }
  0x1b   :  { %100 = vmatprep.subr.mxu0 %v63_v13  ;;  %v1111_v42 = vld [vmem:[%s1475_s2 + $0x48] sm:$0xff]  ;;  %v1118_v43 = vld [vmem:[%s1475_s2 + $0x50] sm:$0xff]  ;;  %v1125_v44 = vld [vmem:[%s1475_s2 + $0x58] sm:$0xff] }
  0x1c   :  { %101 = vmatpush1.msra.mxu0 %v62_v14  ;;  %v1132_v45 = vld [vmem:[%s1475_s2 + $0x60] sm:$0xff]  ;;  %v1139_v46 = vld [vmem:[%s1475_s2 + $0x68] sm:$0xff]  ;;  %v1146_v47 = vld [vmem:[%s1475_s2 + $0x70] sm:$0xff] }
  0x1d   :  { %102 = vmatprep.subr.mxu0 %v61_v15  ;;  %v1153_v48 = vld [vmem:[%s1475_s2 + $0x78] sm:$0xff]  ;;  %v456_v50 = vld [vmem:[#allocation2 + $0x1f0] sm:$0xff]  ;;  %v455_v51 = vld [vmem:[#allocation2 + $0x1e8] sm:$0xff] }
  0x1e   :  { %103 = vmatpush1.msra.mxu0 %v60_v16  ;;  %v457_v49 = vld [vmem:[#allocation2 + $0x1f8] sm:$0xff]  ;;  %v454_v52 = vld [vmem:[#allocation2 + $0x1e0] sm:$0xff]  ;;  %v452_v54 = vld [vmem:[#allocation2 + $0x1d0] sm:$0xff] }
  0x1f   :  { %104 = vmatprep.subr.mxu0 %v59_v17  ;;  %471 = vmatprep.subr.mxu1 %v457_v49  ;;  %v453_v53 = vld [vmem:[#allocation2 + $0x1d8] sm:$0xff]  ;;  %v451_v55 = vld [vmem:[#allocation2 + $0x1c8] sm:$0xff]  ;;  %v450_v56 = vld [vmem:[#allocation2 + $0x1c0] sm:$0xff] }
  0x20   :  { %105 = vmatpush1.msra.mxu0 %v58_v18  ;;  %472 = vmatpush1.msra.mxu1 %v456_v50  ;;  %v449_v57 = vld [vmem:[#allocation2 + $0x1b8] sm:$0xff]  ;;  %v448_v58 = vld [vmem:[#allocation2 + $0x1b0] sm:$0xff]  ;;  %v447_v59 = vld [vmem:[#allocation2 + $0x1a8] sm:$0xff]  ;;  %v78_v18 = vlaneseq }
  0x21   :  { %106 = vmatprep.subr.mxu0 %v57_v19  ;;  %473 = vmatprep.subr.mxu1 %v455_v51  ;;  %v446_v60 = vld [vmem:[#allocation2 + $0x1a0] sm:$0xff]  ;;  %v445_v61 = vld [vmem:[#allocation2 + $0x198] sm:$0xff]  ;;  %v444_v62 = vld [vmem:[#allocation2 + $0x190] sm:$0xff] }
  0x22   :  { %107 = vmatpush1.msra.mxu0 %v56_v20  ;;  %474 = vmatpush1.msra.mxu1 %v454_v52  ;;  %v443_v63 = vld [vmem:[#allocation2 + $0x188] sm:$0xff]  ;;  %v442_v1 = vld [vmem:[#allocation2 + $0x180] sm:$0xff]  ;;  %v441_v2 = vld [vmem:[#allocation2 + $0x178] sm:$0xff]  ;;  %v1156_v19 = vshrl.u32 %v78_v18, 7 }
  0x23   :  { %108 = vmatprep.subr.mxu0 %v55_v21  ;;  %475 = vmatprep.subr.mxu1 %v453_v53  ;;  %v440_v3 = vld [vmem:[#allocation2 + $0x170] sm:$0xff]  ;;  %v439_v4 = vld [vmem:[#allocation2 + $0x168] sm:$0xff]  ;;  %v438_v5 = vld [vmem:[#allocation2 + $0x160] sm:$0xff] }
  0x24   :  { %109 = vmatpush1.msra.mxu0 %v54_v22  ;;  %476 = vmatpush1.msra.mxu1 %v452_v54  ;;  %v437_v6 = vld [vmem:[#allocation2 + $0x158] sm:$0xff]  ;;  %v436_v7 = vld [vmem:[#allocation2 + $0x150] sm:$0xff]  ;;  %v435_v8 = vld [vmem:[#allocation2 + $0x148] sm:$0xff]  ;;  %v84_v20 = vsub.s32 1, %v1156_v19 }
  0x25   :  { %110 = vmatprep.subr.mxu0 %v53_v23  ;;  %477 = vmatprep.subr.mxu1 %v451_v55  ;;  %v434_v9 = vld [vmem:[#allocation2 + $0x140] sm:$0xff]  ;;  %v433_v10 = vld [vmem:[#allocation2 + $0x138] sm:$0xff]  ;;  %v432_v11 = vld [vmem:[#allocation2 + $0x130] sm:$0xff] }
  0x26   :  { %111 = vmatpush1.msra.mxu0 %v52_v24  ;;  %478 = vmatpush1.msra.mxu1 %v450_v56  ;;  %v431_v12 = vld [vmem:[#allocation2 + $0x128] sm:$0xff]  ;;  %v430_v13 = vld [vmem:[#allocation2 + $0x120] sm:$0xff]  ;;  %v429_v14 = vld [vmem:[#allocation2 + $0x118] sm:$0xff] }
  0x27   :  { %112 = vmatprep.subr.mxu0 %v51_v25  ;;  %479 = vmatprep.subr.mxu1 %v449_v57  ;;  %v428_v15 = vld [vmem:[#allocation2 + $0x110] sm:$0xff]  ;;  %v427_v16 = vld [vmem:[#allocation2 + $0x108] sm:$0xff]  ;;  %v426_v17 = vld [vmem:[#allocation2 + $0x100] sm:$0xff] }
  0x28   :  { %113 = vmatpush1.msra.mxu0 %v50_v26  ;;  %480 = vmatpush1.msra.mxu1 %v448_v58  ;;  %v76_v21 = vld [vmem:[%s1474_s1] sm:$0x3] }
  0x29   :  { %114 = vmatprep.subr.mxu0 %v49_v27  ;;  %481 = vmatprep.subr.mxu1 %v447_v59  ;;  %v1164_v22 = vrot.slane %v76_v21, %v84_v20 }
  0x2a   :  { %115 = vmatpush1.msra.mxu0 %v48_v28  ;;  %482 = vmatpush1.msra.mxu1 %v446_v60 }
  0x2b   :  { %116 = vmatprep.subr.mxu0 %v47_v29  ;;  %483 = vmatprep.subr.mxu1 %v445_v61 }
  0x2c   :  { %117 = vmatpush1.msra.mxu0 %v46_v30  ;;  %484 = vmatpush1.msra.mxu1 %v444_v62 }
  0x2d   :  { %118 = vmatprep.subr.mxu0 %v45_v31  ;;  %485 = vmatprep.subr.mxu1 %v443_v63 }
  0x2e   :  { %119 = vmatpush1.msra.mxu0 %v44_v32  ;;  %486 = vmatpush1.msra.mxu1 %v442_v1 }
  0x2f   :  { %153 = vmatmul.mubr.f32.vlgmr.msra.gmra.mxu0 %v1048_v33  ;;  %487 = vmatprep.subr.mxu1 %v441_v2 }
  0x30   :  { %158 = vmatprep.mubr.f32.mxu0 %v1019_v0  ;;  %488 = vmatpush1.msra.mxu1 %v440_v3  ;;  %v80_v3 = vsub.s32 0, %v1156_v19 }
  0x31   :  { %489 = vmatprep.subr.mxu1 %v439_v4 }
  0x32   :  { %490 = vmatpush1.msra.mxu1 %v438_v5 }
  0x33   :  { %159 = vmatmul.mubr.f32.gmra.mxu0 %v1055_v34  ;;  %491 = vmatprep.subr.mxu1 %v437_v6 }
  0x34   :  { %164 = vmatprep.mubr.f32.mxu0 %v1019_v0  ;;  %492 = vmatpush1.msra.mxu1 %v436_v7 }
  0x35   :  { %493 = vmatprep.subr.mxu1 %v435_v8 }
  0x36   :  { %494 = vmatpush1.msra.mxu1 %v434_v9 }
  0x37   :  { %165 = vmatmul.mubr.f32.gmra.mxu0 %v1062_v35  ;;  %495 = vmatprep.subr.mxu1 %v433_v10  ;;  %v1188_v10 = vrot.slane %v76_v21, %v80_v3 }
  0x38   :  { %170 = vmatprep.mubr.f32.mxu0 %v1019_v0  ;;  %496 = vmatpush1.msra.mxu1 %v432_v11 }
  0x39   :  { %497 = vmatprep.subr.mxu1 %v431_v12 }
  0x3a   :  { %498 = vmatpush1.msra.mxu1 %v430_v13 }
  0x3b   :  { %171 = vmatmul.mubr.f32.gmra.mxu0 %v1069_v36  ;;  %499 = vmatprep.subr.mxu1 %v429_v14 }
  0x3c   :  { %176 = vmatprep.mubr.f32.mxu0 %v1019_v0  ;;  %500 = vmatpush1.msra.mxu1 %v428_v15 }
  0x3d   :  { %501 = vmatprep.subr.mxu1 %v427_v16 }
  0x3e   :  { %502 = vmatpush1.msra.mxu1 %v426_v17 }
  0x3f   :  { %177 = vmatmul.mubr.f32.gmra.mxu0 %v1076_v37 }
  0x40   :  { %182 = vmatprep.mubr.f32.mxu0 %v1019_v0 }
  0x43   :  { %183 = vmatmul.mubr.f32.gmra.mxu0 %v1083_v38 }
  0x44   :  { %188 = vmatprep.mubr.f32.mxu0 %v1019_v0 }
  0x47   :  { %189 = vmatmul.mubr.f32.gmra.mxu0 %v1090_v39 }
  0x48   :  { %194 = vmatprep.mubr.f32.mxu0 %v1019_v0 }
  0x4b   :  { %195 = vmatmul.mubr.f32.gmra.mxu0 %v1097_v40 }
  0x4c   :  { %200 = vmatprep.mubr.f32.mxu0 %v1019_v0 }
  0x4f   :  { %201 = vmatmul.mubr.f32.gmra.mxu0 %v1104_v41 }
  0x50   :  { %206 = vmatprep.mubr.f32.mxu0 %v1019_v0 }
  0x53   :  { %207 = vmatmul.mubr.f32.gmra.mxu0 %v1111_v42 }
  0x54   :  { %212 = vmatprep.mubr.f32.mxu0 %v1019_v0 }
  0x57   :  { %213 = vmatmul.mubr.f32.gmra.mxu0 %v1118_v43 }
  0x58   :  { %218 = vmatprep.mubr.f32.mxu0 %v1019_v0 }
  0x5b   :  { %219 = vmatmul.mubr.f32.gmra.mxu0 %v1125_v44 }
  0x5c   :  { %224 = vmatprep.mubr.f32.mxu0 %v1019_v0 }
  0x5f   :  { %225 = vmatmul.mubr.f32.gmra.mxu0 %v1132_v45 }
  0x60   :  { %230 = vmatprep.mubr.f32.mxu0 %v1019_v0 }
  0x63   :  { %231 = vmatmul.mubr.f32.gmra.mxu0 %v1139_v46 }
  0x64   :  { %236 = vmatprep.mubr.f32.mxu0 %v1019_v0 }
  0x67   :  { %237 = vmatmul.mubr.f32.gmra.mxu0 %v1146_v47 }
  0x68   :  { %242 = vmatprep.mubr.f32.mxu0 %v1019_v0 }
  0x6b   :  { %243 = vmatmul.mubr.f32.gmra.mxu0 %v1153_v48 }
  0xef   :  { %v154_v23 = vpop.f32.mrf.mxu0 }
  0xf0   :  { %v155_v17 = vadd.f32 %v154_v23, %v1188_v10 }
  0xf1   :  { %v156_v24 = vpop.f32.mrf.mxu0 }
  0xf2   :  { %v157_v25 = vadd.f32 %v156_v24, %v1164_v22 }
  0xf3   :  { %v160_v26 = vpop.f32.mrf.mxu0 }
  0xf4   :  { %v829_v27 = vmul.f32 -1.442695, %v157_v25 }
  0xf5   :  { %v162_v28 = vpop.f32.mrf.mxu0 }
  0xf6   :  { %866 = vpow2.f32 %v829_v27  ;;  %v163_v29 = vadd.f32 %v162_v28, %v1164_v22 }
  0xf7   :  { %v1168_v30 = vpop.f32.mrf.mxu0 }
  0xf8   :  { %v830_v31 = vmul.f32 -1.442695, %v163_v29 }
  0xf9   :  { %v168_v32 = vpop.f32.mrf.mxu0 }
  0xfa   :  { %868 = vpow2.f32 %v830_v31  ;;  %v169_v49 = vadd.f32 %v168_v32, %v1164_v22  ;;  %v377_v31 = vmax.f32 %v155_v17, 0.0 }
  0xfb   :  { %v1171_v50 = vpop.f32.mrf.mxu0 }
  0xfc   :  { %v831_v51 = vmul.f32 -1.442695, %v169_v49 }
  0xfd   :  { %v174_v52 = vpop.f32.mrf.mxu0 }
  0xfe   :  { %870 = vpow2.f32 %v831_v51  ;;  %v175_v53 = vadd.f32 %v174_v52, %v1164_v22  ;;  %v161_v51 = vadd.f32 %v160_v26, %v1188_v10 }
  0xff   :  { %v1174_v54 = vpop.f32.mrf.mxu0 }
 0x100   :  { %v832_v55 = vmul.f32 -1.442695, %v175_v53  ;;  %v378_v26 = vmax.f32 %v161_v51, 0.0  ;;  %v179_v51 = vadd.f32 %v1174_v54, %v1188_v10 }
 0x101   :  { %v180_v56 = vpop.f32.mrf.mxu0 }
 0x102   :  { %872 = vpow2.f32 %v832_v55  ;;  %v181_v57 = vadd.f32 %v180_v56, %v1164_v22  ;;  %v381_v54 = vmax.f32 %v179_v51, 0.0 }
 0x103   :  { %v867_v58 = vpop.eup %866  ;;  %v1177_v59 = vpop.f32.mrf.mxu0 }
 0x104   :  { %v297_v60 = vadd.f32 1.0, %v867_v58  ;;  %v833_v61 = vmul.f32 -1.442695, %v181_v57 }
 0x105   :  { %v186_v62 = vpop.f32.mrf.mxu0 }
 0x106   :  { %874 = vrcp.f32 %v297_v60  ;;  %v187_v63 = vadd.f32 %v186_v62, %v1164_v22 }
 0x107   :  { %v869_v1 = vpop.eup %868  ;;  %876 = vpow2.f32 %v833_v61  ;;  %v1180_v2 = vpop.f32.mrf.mxu0  ;;  %v167_v61 = vadd.f32 %v1168_v30, %v1188_v10 }
 0x108   :  { %v298_v4 = vadd.f32 1.0, %v869_v1  ;;  %v834_v5 = vmul.f32 -1.442695, %v187_v63 }
 0x109   :  { %v192_v6 = vpop.f32.mrf.mxu0 }
 0x10a   :  { %878 = vrcp.f32 %v298_v4  ;;  %v193_v7 = vadd.f32 %v192_v6, %v1164_v22 }
 0x10b   :  { %v871_v8 = vpop.eup %870  ;;  %880 = vpow2.f32 %v834_v5  ;;  %v1184_v9 = vpop.f32.mrf.mxu0 }
 0x10c   :  { %v299_v11 = vadd.f32 1.0, %v871_v8  ;;  %v835_v12 = vmul.f32 -1.442695, %v193_v7 }
 0x10d   :  { %v198_v13 = vpop.f32.mrf.mxu0 }
 0x10e   :  { %882 = vrcp.f32 %v299_v11  ;;  %v199_v14 = vadd.f32 %v198_v13, %v1164_v22 }
 0x10f   :  { %v873_v15 = vpop.eup %872  ;;  %884 = vpow2.f32 %v835_v12  ;;  %v1191_v16 = vpop.f32.mrf.mxu0  ;;  %v379_v12 = vmax.f32 %v167_v61, 0.0 }
 0x110   :  { %v300_v18 = vadd.f32 1.0, %v873_v15  ;;  %v836_v24 = vmul.f32 -1.442695, %v199_v14  ;;  %v173_v15 = vadd.f32 %v1171_v50, %v1188_v10 }
 0x111   :  { %v204_v25 = vpop.f32.mrf.mxu0 }
 0x112   :  { %886 = vrcp.f32 %v300_v18  ;;  %v205_v27 = vadd.f32 %v204_v25, %v1164_v22 }
 0x113   :  { %v875_v21 = vpop.eup %874  ;;  %888 = vpow2.f32 %v836_v24  ;;  %v1195_v28 = vpop.f32.mrf.mxu0 }
 0x114   :  { %v877_v29 = vpop.eup %876  ;;  %v837_v32 = vmul.f32 -1.442695, %v205_v27  ;;  %v361_v49 = vsub.f32 1.0, %v875_v21  ;;  %v345_v55 = vmul.f32 %v875_v21, %v1048_v33 }
 0x115   :  { %v301_v52 = vadd.f32 1.0, %v877_v29  ;;  %v210_v53 = vpop.f32.mrf.mxu0 }
 0x116   :  { %890 = vpow2.f32 %v837_v32  ;;  %v211_v23 = vadd.f32 %v210_v53, %v1164_v22  ;;  %v393_v56 = vmul.f32 %v377_v31, %v361_v49  ;;  %v380_v49 = vmax.f32 %v173_v15, 0.0 }
 0x117   :  { %v879_v57 = vpop.eup %878  ;;  %892 = vrcp.f32 %v301_v52  ;;  %v1200_v58 = vpop.f32.mrf.mxu0  ;;  %v191_v15 = vadd.f32 %v1180_v2, %v1188_v10 }
 0x118   :  { %v881_v60 = vpop.eup %880  ;;  %v838_v62 = vmul.f32 -1.442695, %v211_v23  ;;  %v1204_v63 = vadd.f32 %v393_v56, %v345_v55  ;;  %v362_v5 = vsub.f32 1.0, %v879_v57  ;;  %v346_v30 = vmul.f32 %v879_v57, %v1055_v34 }
 0x119   :  { %v302_v1 = vadd.f32 1.0, %v881_v60  ;;  %v216_v4 = vpop.f32.mrf.mxu0  ;;  %v383_v2 = vmax.f32 %v191_v15, 0.0 }
 0x11a   :  { %894 = vpow2.f32 %v838_v62  ;;  %v217_v6 = vadd.f32 %v216_v4, %v1164_v22  ;;  %536 = vmatmul.mubr.f32.vlgmr.msra.gmra.mxu1 %v1204_v63  ;;  %v394_v8 = vmul.f32 %v378_v26, %v362_v5 }
 0x11b   :  { %v883_v33 = vpop.eup %882  ;;  %896 = vrcp.f32 %v302_v1  ;;  %v1208_v7 = vpop.f32.mrf.mxu0  ;;  %541 = vmatprep.mubr.f32.mxu1 %v1019_v0  ;;  %v185_v1 = vadd.f32 %v1177_v59, %v1188_v10 }
 0x11c   :  { %v885_v11 = vpop.eup %884  ;;  %v839_v13 = vmul.f32 -1.442695, %v217_v6  ;;  %v363_v14 = vsub.f32 1.0, %v883_v33  ;;  %v1214_v24 = vadd.f32 %v394_v8, %v346_v30  ;;  %v347_v27 = vmul.f32 %v883_v33, %v1062_v35 }
 0x11d   :  { %v303_v17 = vadd.f32 1.0, %v885_v11  ;;  %v222_v18 = vpop.f32.mrf.mxu0  ;;  %v382_v59 = vmax.f32 %v185_v1, 0.0 }
 0x11e   :  { %898 = vpow2.f32 %v839_v13  ;;  %v223_v25 = vadd.f32 %v222_v18, %v1164_v22  ;;  %v395_v21 = vmul.f32 %v379_v12, %v363_v14  ;;  %542 = vmatmul.mubr.f32.gmra.mxu1 %v1214_v24 }
 0x11f   :  { %v887_v29 = vpop.eup %886  ;;  %900 = vrcp.f32 %v303_v17  ;;  %v1219_v34 = vpop.f32.mrf.mxu0  ;;  %547 = vmatprep.mubr.f32.mxu1 %v1019_v0 }
 0x120   :  { %v889_v31 = vpop.eup %888  ;;  %v840_v32 = vmul.f32 -1.442695, %v223_v25  ;;  %v1222_v50 = vadd.f32 %v395_v21, %v347_v27  ;;  %v364_v35 = vsub.f32 1.0, %v887_v29  ;;  %v348_v57 = vmul.f32 %v887_v29, %v1069_v36 }
 0x121   :  { %v304_v52 = vadd.f32 1.0, %v889_v31  ;;  %v228_v53 = vpop.f32.mrf.mxu0 }
 0x122   :  { %902 = vpow2.f32 %v840_v32  ;;  %v229_v23 = vadd.f32 %v228_v53, %v1164_v22  ;;  %548 = vmatmul.mubr.f32.gmra.mxu1 %v1222_v50  ;;  %v396_v60 = vmul.f32 %v380_v49, %v364_v35 }
 0x123   :  { %v891_v55 = vpop.eup %890  ;;  %904 = vrcp.f32 %v304_v52  ;;  %v1228_v56 = vpop.f32.mrf.mxu0  ;;  %553 = vmatprep.mubr.f32.mxu1 %v1019_v0  ;;  %v197_v52 = vadd.f32 %v1184_v9, %v1188_v10 }
 0x124   :  { %v893_v61 = vpop.eup %892  ;;  %v305_v62 = vadd.f32 1.0, %v891_v55  ;;  %v841_v26 = vmul.f32 -1.442695, %v229_v23  ;;  %v1234_v5 = vadd.f32 %v396_v60, %v348_v57 }
 0x125   :  { %v234_v4 = vpop.f32.mrf.mxu0  ;;  %v365_v6 = vsub.f32 1.0, %v893_v61  ;;  %v349_v8 = vmul.f32 %v893_v61, %v1076_v37 }
 0x126   :  { %906 = vrcp.f32 %v305_v62  ;;  %v235_v33 = vadd.f32 %v234_v4, %v1164_v22  ;;  %554 = vmatmul.mubr.f32.gmra.mxu1 %v1234_v5  ;;  %v203_v62 = vadd.f32 %v1191_v16, %v1188_v10  ;;  %v209_v16 = vadd.f32 %v1195_v28, %v1188_v10 }
 0x127   :  { %v895_v30 = vpop.eup %894  ;;  %908 = vpow2.f32 %v841_v26  ;;  %v1238_v36 = vpop.f32.mrf.mxu0  ;;  %v397_v11 = vmul.f32 %v381_v54, %v365_v6  ;;  %559 = vmatprep.mubr.f32.mxu1 %v1019_v0  ;;  %v384_v54 = vmax.f32 %v197_v52, 0.0 }
 0x128   :  { %v897_v12 = vpop.eup %896  ;;  %v306_v13 = vadd.f32 1.0, %v895_v30  ;;  %v842_v14 = vmul.f32 -1.442695, %v235_v33  ;;  %v385_v30 = vmax.f32 %v203_v62, 0.0  ;;  %v386_v15 = vmax.f32 %v209_v16, 0.0 }
 0x129   :  { %v240_v17 = vpop.f32.mrf.mxu0  ;;  %v1244_v18 = vadd.f32 %v397_v11, %v349_v8  ;;  %v366_v25 = vsub.f32 1.0, %v897_v12  ;;  %v350_v29 = vmul.f32 %v897_v12, %v1083_v38 }
 0x12a   :  { %910 = vrcp.f32 %v306_v13  ;;  %v241_v27 = vadd.f32 %v240_v17, %v1164_v22  ;;  %v215_v17 = vadd.f32 %v1200_v58, %v1188_v10 }
 0x12b   :  { %v899_v21 = vpop.eup %898  ;;  %912 = vpow2.f32 %v842_v14  ;;  %560 = vmatmul.mubr.f32.gmra.mxu1 %v1244_v18  ;;  %v1248_v37 = vpop.f32.mrf.mxu0  ;;  %v398_v31 = vmul.f32 %v382_v59, %v366_v25 }
 0x12c   :  { %v901_v32 = vpop.eup %900  ;;  %v307_v49 = vadd.f32 1.0, %v899_v21  ;;  %v843_v51 = vmul.f32 -1.442695, %v241_v27  ;;  %565 = vmatprep.mubr.f32.mxu1 %v1019_v0 }
 0x12d   :  { %v246_v53 = vpop.f32.mrf.mxu0  ;;  %v1254_v35 = vadd.f32 %v398_v31, %v350_v29  ;;  %v367_v23 = vsub.f32 1.0, %v901_v32  ;;  %v351_v38 = vmul.f32 %v901_v32, %v1090_v39  ;;  %v387_v32 = vmax.f32 %v215_v17, 0.0 }
 0x12e   :  { %914 = vrcp.f32 %v307_v49  ;;  %v247_v55 = vadd.f32 %v246_v53, %v1164_v22  ;;  %v221_v49 = vadd.f32 %v1208_v7, %v1188_v10 }
 0x12f   :  { %v903_v57 = vpop.eup %902  ;;  %916 = vpow2.f32 %v843_v51  ;;  %566 = vmatmul.mubr.f32.gmra.mxu1 %v1254_v35  ;;  %v399_v60 = vmul.f32 %v383_v2, %v367_v23 }
 0x130   :  { %v905_v61 = vpop.eup %904  ;;  %v308_v26 = vadd.f32 1.0, %v903_v57  ;;  %v844_v9 = vmul.f32 -1.442695, %v247_v55  ;;  %571 = vmatprep.mubr.f32.mxu1 %v1019_v0  ;;  %v388_v55 = vmax.f32 %v221_v49, 0.0 }
 0x131   :  { %v1262_v1 = vadd.f32 %v399_v60, %v351_v38  ;;  %v368_v4 = vsub.f32 1.0, %v905_v61  ;;  %v352_v39 = vmul.f32 %v905_v61, %v1097_v40  ;;  %v227_v38 = vadd.f32 %v1219_v34, %v1188_v10 }
 0x132   :  { %918 = vrcp.f32 %v308_v26 }
 0x133   :  { %v907_v22 = vpop.eup %906  ;;  %920 = vpow2.f32 %v844_v9  ;;  %572 = vmatmul.mubr.f32.gmra.mxu1 %v1262_v1  ;;  %v400_v6 = vmul.f32 %v384_v54, %v368_v4  ;;  %v389_v9 = vmax.f32 %v227_v38, 0.0  ;;  %v233_v54 = vadd.f32 %v1228_v56, %v1188_v10 }
 0x134   :  { %v909_v33 = vpop.eup %908  ;;  %577 = vmatprep.mubr.f32.mxu1 %v1019_v0  ;;  %v369_v8 = vsub.f32 1.0, %v907_v22  ;;  %v353_v13 = vmul.f32 %v907_v22, %v1104_v41 }
 0x135   :  { %v309_v11 = vadd.f32 1.0, %v909_v33  ;;  %v1269_v12 = vadd.f32 %v400_v6, %v352_v39  ;;  %v390_v39 = vmax.f32 %v233_v54, 0.0  ;;  %v239_v6 = vadd.f32 %v1238_v36, %v1188_v10 }
 0x136   :  { %v401_v14 = vmul.f32 %v385_v30, %v369_v8 }
 0x137   :  { %v911_v59 = vpop.eup %910  ;;  %922 = vrcp.f32 %v309_v11  ;;  %578 = vmatmul.mubr.f32.gmra.mxu1 %v1269_v12  ;;  %v245_v11 = vadd.f32 %v1248_v37, %v1188_v10 }
 0x138   :  { %v913_v40 = vpop.eup %912  ;;  %583 = vmatprep.mubr.f32.mxu1 %v1019_v0  ;;  %v1276_v28 = vadd.f32 %v401_v14, %v353_v13  ;;  %v370_v25 = vsub.f32 1.0, %v911_v59  ;;  %v354_v21 = vmul.f32 %v911_v59, %v1111_v42 }
 0x139   :  { %v310_v27 = vadd.f32 1.0, %v913_v40 }
 0x13a   :  { %v402_v29 = vmul.f32 %v386_v15, %v370_v25 }
 0x13b   :  { %v915_v41 = vpop.eup %914  ;;  %924 = vrcp.f32 %v310_v27  ;;  %584 = vmatmul.mubr.f32.gmra.mxu1 %v1276_v28 }
 0x13c   :  { %v917_v31 = vpop.eup %916  ;;  %589 = vmatprep.mubr.f32.mxu1 %v1019_v0  ;;  %v1283_v58 = vadd.f32 %v402_v29, %v354_v21  ;;  %v371_v51 = vsub.f32 1.0, %v915_v41  ;;  %v355_v52 = vmul.f32 %v915_v41, %v1118_v43 }
 0x13d   :  { %v311_v2 = vadd.f32 1.0, %v917_v31 }
 0x13e   :  { %v403_v53 = vmul.f32 %v387_v32, %v371_v51 }
 0x13f   :  { %v919_v42 = vpop.eup %918  ;;  %926 = vrcp.f32 %v311_v2  ;;  %590 = vmatmul.mubr.f32.gmra.mxu1 %v1283_v58 }
 0x140   :  { %v921_v23 = vpop.eup %920  ;;  %595 = vmatprep.mubr.f32.mxu1 %v1019_v0  ;;  %v1288_v57 = vadd.f32 %v403_v53, %v355_v52  ;;  %v372_v7 = vsub.f32 1.0, %v919_v42  ;;  %v356_v61 = vmul.f32 %v919_v42, %v1125_v44 }
 0x141   :  { %v312_v60 = vadd.f32 1.0, %v921_v23 }
 0x142   :  { %v404_v62 = vmul.f32 %v388_v55, %v372_v7 }
 0x143   :  { %928 = vrcp.f32 %v312_v60  ;;  %596 = vmatmul.mubr.f32.gmra.mxu1 %v1288_v57 }
 0x144   :  { %v923_v43 = vpop.eup %922  ;;  %601 = vmatprep.mubr.f32.mxu1 %v1019_v0  ;;  %v1295_v26 = vadd.f32 %v404_v62, %v356_v61 }
 0x145   :  { %v373_v4 = vsub.f32 1.0, %v923_v43  ;;  %v357_v34 = vmul.f32 %v923_v43, %v1132_v45  ;;  %v391_v45 = vmax.f32 %v239_v6, 0.0 }
 0x147   :  { %602 = vmatmul.mubr.f32.gmra.mxu1 %v1295_v26  ;;  %v405_v22 = vmul.f32 %v389_v9, %v373_v4 }
 0x148   :  { %v925_v44 = vpop.eup %924  ;;  %607 = vmatprep.mubr.f32.mxu1 %v1019_v0 }
 0x149   :  { %v1304_v33 = vadd.f32 %v405_v22, %v357_v34  ;;  %v374_v30 = vsub.f32 1.0, %v925_v44  ;;  %v358_v56 = vmul.f32 %v925_v44, %v1139_v46  ;;  %v392_v46 = vmax.f32 %v245_v11, 0.0 }
 0x14b   :  { %608 = vmatmul.mubr.f32.gmra.mxu1 %v1304_v33  ;;  %v406_v16 = vmul.f32 %v390_v39, %v374_v30 }
 0x14c   :  { %v927_v8 = vpop.eup %926  ;;  %613 = vmatprep.mubr.f32.mxu1 %v1019_v0 }
 0x14d   :  { %v1311_v13 = vadd.f32 %v406_v16, %v358_v56  ;;  %v375_v14 = vsub.f32 1.0, %v927_v8  ;;  %v359_v36 = vmul.f32 %v927_v8, %v1146_v47  ;;  %v845_v47 = vld [vmem:[%s1474_s1 + $0x2] sm:$0x3] }
 0x14e   :  { %v1329_v27 = vrot.slane %v845_v47, %v84_v20  ;;  %v1350_v16 = vrot.slane %v845_v47, %v80_v3 }
 0x14f   :  { %614 = vmatmul.mubr.f32.gmra.mxu1 %v1311_v13  ;;  %v407_v59 = vmul.f32 %v391_v45, %v375_v14 }
 0x150   :  { %v929_v40 = vpop.eup %928  ;;  %619 = vmatprep.mubr.f32.mxu1 %v1019_v0 }
 0x151   :  { %v1316_v15 = vadd.f32 %v407_v59, %v359_v36  ;;  %v376_v17 = vsub.f32 1.0, %v929_v40  ;;  %v360_v25 = vmul.f32 %v929_v40, %v1153_v48 }
 0x153   :  { %620 = vmatmul.mubr.f32.gmra.mxu1 %v1316_v15  ;;  %v408_v10 = vmul.f32 %v392_v46, %v376_v17 }
 0x154   :  { %625 = vmatprep.mubr.f32.mxu1 %v1019_v0 }
 0x155   :  { %v1321_v37 = vadd.f32 %v408_v10, %v360_v25 }
 0x157   :  { %626 = vmatmul.mubr.f32.gmra.mxu1 %v1321_v37 }
 0x1da   :  { %v537_v21 = vpop.f32.mrf.mxu1 }
 0x1db   :  { %v538_v40 = vadd.f32 %v537_v21, %v1350_v16 }
 0x1dc   :  { %v539_v29 = vpop.f32.mrf.mxu1 }
 0x1dd   :  { %v540_v41 = vadd.f32 %v539_v29, %v1329_v27  ;;  %v760_v29 = vmax.f32 %v538_v40, 0.0 }
 0x1de   :  { %v543_v31 = vpop.f32.mrf.mxu1 }
 0x1df   :  { %v846_v48 = vmul.f32 -1.442695, %v540_v41 }
 0x1e0   :  { %v545_v0 = vpop.f32.mrf.mxu1 }
 0x1e1   :  { %930 = vpow2.f32 %v846_v48  ;;  %v546_v32 = vadd.f32 %v545_v0, %v1329_v27  ;;  %v544_v0 = vadd.f32 %v543_v31, %v1350_v16 }
 0x1e2   :  { %v1333_v49 = vpop.f32.mrf.mxu1 }
 0x1e3   :  { %v847_v51 = vmul.f32 -1.442695, %v546_v32  ;;  %v550_v31 = vadd.f32 %v1333_v49, %v1350_v16 }
 0x1e4   :  { %v551_v2 = vpop.f32.mrf.mxu1 }
 0x1e5   :  { %932 = vpow2.f32 %v847_v51  ;;  %v552_v52 = vadd.f32 %v551_v2, %v1329_v27 }
 0x1e6   :  { %v1336_v53 = vpop.f32.mrf.mxu1 }
 0x1e7   :  { %v848_v20 = vmul.f32 -1.442695, %v552_v52 }
 0x1e8   :  { %v557_v42 = vpop.f32.mrf.mxu1 }
 0x1e9   :  { %934 = vpow2.f32 %v848_v20  ;;  %v558_v23 = vadd.f32 %v557_v42, %v1329_v27 }
 0x1eb   :  { %v1339_v55 = vpop.f32.mrf.mxu1  ;;  %v849_v7 = vmul.f32 -1.442695, %v558_v23 }
 0x1ed   :  { %v563_v38 = vpop.f32.mrf.mxu1  ;;  %936 = vpow2.f32 %v849_v7 }
 0x1ee   :  { %v931_v60 = vpop.eup %930  ;;  %v564_v61 = vadd.f32 %v563_v38, %v1329_v27 }
 0x1ef   :  { %v680_v62 = vadd.f32 1.0, %v931_v60  ;;  %v1342_v43 = vpop.f32.mrf.mxu1  ;;  %v761_v60 = vmax.f32 %v544_v0, 0.0 }
 0x1f0   :  { %v850_v9 = vmul.f32 -1.442695, %v564_v61 }
 0x1f1   :  { %938 = vrcp.f32 %v680_v62  ;;  %v569_v54 = vpop.f32.mrf.mxu1 }
 0x1f2   :  { %940 = vpow2.f32 %v850_v9  ;;  %v570_v4 = vadd.f32 %v569_v54, %v1329_v27  ;;  %v933_v34 = vpop.eup %932 }
 0x1f3   :  { %v1345_v22 = vpop.f32.mrf.mxu1  ;;  %v681_v44 = vadd.f32 1.0, %v933_v34 }
 0x1f4   :  { %v851_v39 = vmul.f32 -1.442695, %v570_v4 }
 0x1f5   :  { %v575_v6 = vpop.f32.mrf.mxu1  ;;  %942 = vrcp.f32 %v681_v44 }
 0x1f6   :  { %v576_v30 = vadd.f32 %v575_v6, %v1329_v27  ;;  %v935_v56 = vpop.eup %934  ;;  %944 = vpow2.f32 %v851_v39  ;;  %v556_v39 = vadd.f32 %v1336_v53, %v1350_v16 }
 0x1f7   :  { %v1352_v8 = vpop.f32.mrf.mxu1  ;;  %v682_v45 = vadd.f32 1.0, %v935_v56  ;;  %v762_v56 = vmax.f32 %v550_v31, 0.0 }
 0x1f8   :  { %v852_v11 = vmul.f32 -1.442695, %v576_v30 }
 0x1f9   :  { %v581_v14 = vpop.f32.mrf.mxu1  ;;  %946 = vrcp.f32 %v682_v45 }
 0x1fa   :  { %v582_v36 = vadd.f32 %v581_v14, %v1329_v27  ;;  %v937_v59 = vpop.eup %936  ;;  %948 = vpow2.f32 %v852_v11 }
 0x1fb   :  { %v1356_v46 = vpop.f32.mrf.mxu1  ;;  %v683_v17 = vadd.f32 1.0, %v937_v59 }
 0x1fc   :  { %v853_v25 = vmul.f32 -1.442695, %v582_v36 }
 0x1fd   :  { %v587_v19 = vpop.f32.mrf.mxu1  ;;  %950 = vrcp.f32 %v683_v17  ;;  %v763_v17 = vmax.f32 %v556_v39, 0.0 }
 0x1fe   :  { %v939_v3 = vpop.eup %938  ;;  %v588_v10 = vadd.f32 %v587_v19, %v1329_v27  ;;  %952 = vpow2.f32 %v853_v25 }
 0x1ff   :  { %v941_v47 = vpop.eup %940  ;;  %v744_v41 = vsub.f32 1.0, %v939_v3  ;;  %v1359_v48 = vpop.f32.mrf.mxu1  ;;  %v728_v51 = vmul.f32 %v939_v3, %v1204_v63 }
 0x200   :  { %v684_v32 = vadd.f32 1.0, %v941_v47  ;;  %v854_v21 = vmul.f32 -1.442695, %v588_v10  ;;  %v562_v47 = vadd.f32 %v1339_v55, %v1350_v16 }
 0x201   :  { %v776_v2 = vmul.f32 %v760_v29, %v744_v41  ;;  %v593_v52 = vpop.f32.mrf.mxu1 }
 0x202   :  { %954 = vrcp.f32 %v684_v32  ;;  %v594_v20 = vadd.f32 %v593_v52, %v1329_v27  ;;  %v943_v42 = vpop.eup %942  ;;  %v764_v55 = vmax.f32 %v562_v47, 0.0 }
 0x203   :  { %v792_v23 = vadd.f32 %v776_v2, %v728_v51  ;;  %956 = vpow2.f32 %v854_v21  ;;  %v1364_v7 = vpop.f32.mrf.mxu1  ;;  %v945_v38 = vpop.eup %944  ;;  %v745_v61 = vsub.f32 1.0, %v943_v42  ;;  %v729_v54 = vmul.f32 %v943_v42, %v1214_v24 }
 0x204   :  { %v855_v62 = vmul.f32 -1.442695, %v594_v20  ;;  %v685_v63 = vadd.f32 1.0, %v945_v38  ;;  %v568_v38 = vadd.f32 %v1342_v43, %v1350_v16 }
 0x205   :  { %808 = vst [vmem:[%s1476_s3] sm:$0xff] %v792_v23  ;;  %v599_v9 = vpop.f32.mrf.mxu1  ;;  %v777_v4 = vmul.f32 %v761_v60, %v745_v61 }
 0x206   :  { %958 = vpow2.f32 %v855_v62  ;;  %v600_v34 = vadd.f32 %v599_v9, %v1329_v27  ;;  %v947_v44 = vpop.eup %946 }
 0x207   :  { %960 = vrcp.f32 %v685_v63  ;;  %v1375_v6 = vpop.f32.mrf.mxu1  ;;  %v949_v49 = vpop.eup %948  ;;  %v793_v30 = vadd.f32 %v777_v4, %v729_v54  ;;  %v746_v45 = vsub.f32 1.0, %v947_v44  ;;  %v730_v24 = vmul.f32 %v947_v44, %v1222_v50 }
 0x208   :  { %v856_v11 = vmul.f32 -1.442695, %v600_v34  ;;  %v686_v14 = vadd.f32 1.0, %v949_v49  ;;  %v765_v44 = vmax.f32 %v568_v38, 0.0  ;;  %v574_v49 = vadd.f32 %v1345_v22, %v1350_v16 }
 0x209   :  { %v605_v36 = vpop.f32.mrf.mxu1  ;;  %809 = vst [vmem:[%s1476_s3 + $0x8] sm:$0xff] %v793_v30  ;;  %v778_v59 = vmul.f32 %v762_v56, %v746_v45 }
 0x20a   :  { %962 = vpow2.f32 %v856_v11  ;;  %v606_v53 = vadd.f32 %v605_v36, %v1329_v27  ;;  %v951_v40 = vpop.eup %950  ;;  %v766_v22 = vmax.f32 %v574_v49, 0.0  ;;  %v604_v49 = vadd.f32 %v1375_v6, %v1350_v16 }
 0x20b   :  { %964 = vrcp.f32 %v686_v14  ;;  %v1382_v25 = vpop.f32.mrf.mxu1  ;;  %v953_v19 = vpop.eup %952  ;;  %v794_v3 = vadd.f32 %v778_v59, %v730_v24  ;;  %v747_v10 = vsub.f32 1.0, %v951_v40  ;;  %v731_v50 = vmul.f32 %v951_v40, %v1234_v5 }
 0x20c   :  { %v857_v29 = vmul.f32 -1.442695, %v606_v53  ;;  %v687_v41 = vadd.f32 1.0, %v953_v19 }
 0x20d   :  { %v611_v0 = vpop.f32.mrf.mxu1  ;;  %810 = vst [vmem:[%s1476_s3 + $0x10] sm:$0xff] %v794_v3  ;;  %v779_v32 = vmul.f32 %v763_v17, %v747_v10  ;;  %v580_v17 = vadd.f32 %v1352_v8, %v1350_v16  ;;  %v586_v8 = vadd.f32 %v1356_v46, %v1350_v16 }
 0x20e   :  { %966 = vpow2.f32 %v857_v29  ;;  %v612_v21 = vadd.f32 %v611_v0, %v1329_v27 }
 0x20f   :  { %v955_v51 = vpop.eup %954  ;;  %968 = vrcp.f32 %v687_v41  ;;  %v1391_v2 = vpop.f32.mrf.mxu1  ;;  %v795_v20 = vadd.f32 %v779_v32, %v731_v50  ;;  %v767_v32 = vmax.f32 %v580_v17, 0.0 }
 0x210   :  { %v957_v52 = vpop.eup %956  ;;  %v748_v42 = vsub.f32 1.0, %v955_v51  ;;  %v858_v23 = vmul.f32 -1.442695, %v612_v21  ;;  %v732_v5 = vmul.f32 %v955_v51, %v1244_v18 }
 0x211   :  { %v688_v60 = vadd.f32 1.0, %v957_v52  ;;  %v617_v61 = vpop.f32.mrf.mxu1  ;;  %811 = vst [vmem:[%s1476_s3 + $0x18] sm:$0xff] %v795_v20  ;;  %v592_v20 = vadd.f32 %v1359_v48, %v1350_v16 }
 0x212   :  { %v780_v31 = vmul.f32 %v764_v55, %v748_v42  ;;  %970 = vpow2.f32 %v858_v23  ;;  %v618_v62 = vadd.f32 %v617_v61, %v1329_v27  ;;  %v768_v23 = vmax.f32 %v586_v8, 0.0 }
 0x213   :  { %v959_v63 = vpop.eup %958  ;;  %972 = vrcp.f32 %v688_v60  ;;  %v1400_v9 = vpop.f32.mrf.mxu1 }
 0x214   :  { %v961_v54 = vpop.eup %960  ;;  %v796_v4 = vadd.f32 %v780_v31, %v732_v5  ;;  %v689_v34 = vadd.f32 1.0, %v959_v63  ;;  %v859_v43 = vmul.f32 -1.442695, %v618_v62  ;;  %v769_v5 = vmax.f32 %v592_v20, 0.0 }
 0x215   :  { %v749_v39 = vsub.f32 1.0, %v961_v54  ;;  %v623_v30 = vpop.f32.mrf.mxu1  ;;  %v733_v45 = vmul.f32 %v961_v54, %v1254_v35  ;;  %v598_v62 = vadd.f32 %v1364_v7, %v1350_v16 }
 0x216   :  { %812 = vst [vmem:[%s1476_s3 + $0x20] sm:$0xff] %v796_v4  ;;  %974 = vrcp.f32 %v689_v34  ;;  %v624_v18 = vadd.f32 %v623_v30, %v1329_v27 }
 0x217   :  { %v963_v56 = vpop.eup %962  ;;  %v781_v11 = vmul.f32 %v765_v44, %v749_v39  ;;  %976 = vpow2.f32 %v859_v43  ;;  %v1409_v14 = vpop.f32.mrf.mxu1  ;;  %v770_v44 = vmax.f32 %v598_v62, 0.0 }
 0x218   :  { %v965_v36 = vpop.eup %964  ;;  %v690_v24 = vadd.f32 1.0, %v963_v56  ;;  %v860_v59 = vmul.f32 -1.442695, %v624_v18 }
 0x219   :  { %v797_v53 = vadd.f32 %v781_v11, %v733_v45  ;;  %v750_v40 = vsub.f32 1.0, %v965_v36  ;;  %v629_v19 = vpop.f32.mrf.mxu1  ;;  %v734_v35 = vmul.f32 %v965_v36, %v1262_v1  ;;  %v771_v11 = vmax.f32 %v604_v49, 0.0 }
 0x21a   :  { %978 = vrcp.f32 %v690_v24  ;;  %v630_v3 = vadd.f32 %v629_v19, %v1329_v27  ;;  %v610_v24 = vadd.f32 %v1382_v25, %v1350_v16  ;;  %v616_v19 = vadd.f32 %v1391_v2, %v1350_v16 }
 0x21b   :  { %v967_v10 = vpop.eup %966  ;;  %813 = vst [vmem:[%s1476_s3 + $0x28] sm:$0xff] %v797_v53  ;;  %v782_v47 = vmul.f32 %v766_v22, %v750_v40  ;;  %980 = vpow2.f32 %v860_v59 }
 0x21c   :  { %v969_v29 = vpop.eup %968  ;;  %v691_v41 = vadd.f32 1.0, %v967_v10  ;;  %v861_v0 = vmul.f32 -1.442695, %v630_v3  ;;  %v772_v40 = vmax.f32 %v610_v24, 0.0 }
 0x21d   :  { %v798_v50 = vadd.f32 %v782_v47, %v734_v35  ;;  %v751_v21 = vsub.f32 1.0, %v969_v29  ;;  %v735_v51 = vmul.f32 %v969_v29, %v1269_v12  ;;  %v773_v47 = vmax.f32 %v616_v19, 0.0 }
 0x21e   :  { %982 = vrcp.f32 %v691_v41  ;;  %v622_v29 = vadd.f32 %v1400_v9, %v1350_v16 }
 0x21f   :  { %v971_v27 = vpop.eup %970  ;;  %814 = vst [vmem:[%s1476_s3 + $0x30] sm:$0xff] %v798_v50  ;;  %v783_v1 = vmul.f32 %v767_v32, %v751_v21  ;;  %984 = vpow2.f32 %v861_v0 }
 0x220   :  { %v973_v52 = vpop.eup %972  ;;  %v692_v55 = vadd.f32 1.0, %v971_v27  ;;  %v774_v32 = vmax.f32 %v622_v29, 0.0 }
 0x221   :  { %v799_v42 = vadd.f32 %v783_v1, %v735_v51  ;;  %v752_v38 = vsub.f32 1.0, %v973_v52  ;;  %v736_v60 = vmul.f32 %v973_v52, %v1276_v28 }
 0x222   :  { %986 = vrcp.f32 %v692_v55 }
 0x223   :  { %v975_v46 = vpop.eup %974  ;;  %815 = vst [vmem:[%s1476_s3 + $0x38] sm:$0xff] %v799_v42  ;;  %v784_v61 = vmul.f32 %v768_v23, %v752_v38 }
 0x224   :  { %v977_v12 = vpop.eup %976  ;;  %v753_v31 = vsub.f32 1.0, %v975_v46  ;;  %v737_v54 = vmul.f32 %v975_v46, %v1283_v58 }
 0x225   :  { %v800_v48 = vadd.f32 %v784_v61, %v736_v60  ;;  %v693_v63 = vadd.f32 1.0, %v977_v12 }
 0x226   :  { %v785_v4 = vmul.f32 %v769_v5, %v753_v31 }
 0x227   :  { %v979_v34 = vpop.eup %978  ;;  %816 = vst [vmem:[%s1476_s3 + $0x40] sm:$0xff] %v800_v48  ;;  %988 = vrcp.f32 %v693_v63 }
 0x228   :  { %v981_v43 = vpop.eup %980  ;;  %v801_v28 = vadd.f32 %v785_v4, %v737_v54  ;;  %v754_v39 = vsub.f32 1.0, %v979_v34  ;;  %v738_v58 = vmul.f32 %v979_v34, %v1288_v57 }
 0x229   :  { %v694_v30 = vadd.f32 1.0, %v981_v43 }
 0x22a   :  { %817 = vst [vmem:[%s1476_s3 + $0x48] sm:$0xff] %v801_v28  ;;  %v786_v7 = vmul.f32 %v770_v44, %v754_v39 }
 0x22b   :  { %v983_v18 = vpop.eup %982  ;;  %990 = vrcp.f32 %v694_v30 }
 0x22c   :  { %v985_v56 = vpop.eup %984  ;;  %v802_v45 = vadd.f32 %v786_v7, %v738_v58  ;;  %v755_v36 = vsub.f32 1.0, %v983_v18  ;;  %v739_v6 = vmul.f32 %v983_v18, %v1295_v26 }
 0x22d   :  { %v695_v59 = vadd.f32 1.0, %v985_v56 }
 0x22e   :  { %818 = vst [vmem:[%s1476_s3 + $0x50] sm:$0xff] %v802_v45  ;;  %v787_v53 = vmul.f32 %v771_v11, %v755_v36 }
 0x22f   :  { %v987_v22 = vpop.eup %986  ;;  %992 = vrcp.f32 %v695_v59 }
 0x230   :  { %v803_v57 = vadd.f32 %v787_v53, %v739_v6  ;;  %v756_v17 = vsub.f32 1.0, %v987_v22  ;;  %v740_v25 = vmul.f32 %v987_v22, %v1304_v33  ;;  %v628_v33 = vadd.f32 %v1409_v14, %v1350_v16 }
 0x232   :  { %819 = vst [vmem:[%s1476_s3 + $0x58] sm:$0xff] %v803_v57  ;;  %v788_v3 = vmul.f32 %v772_v40, %v756_v17  ;;  %v775_v1 = vmax.f32 %v628_v33, 0.0 }
 0x234   :  { %v989_v10 = vpop.eup %988  ;;  %v804_v35 = vadd.f32 %v788_v3, %v740_v25 }
 0x235   :  { %v757_v26 = vsub.f32 1.0, %v989_v10  ;;  %v741_v2 = vmul.f32 %v989_v10, %v1311_v13 }
 0x236   :  { %820 = vst [vmem:[%s1476_s3 + $0x60] sm:$0xff] %v804_v35 }
 0x237   :  { %v789_v41 = vmul.f32 %v773_v47, %v757_v26 }
 0x238   :  { %v991_v0 = vpop.eup %990 }
 0x239   :  { %v805_v50 = vadd.f32 %v789_v41, %v741_v2  ;;  %v758_v21 = vsub.f32 1.0, %v991_v0  ;;  %v742_v9 = vmul.f32 %v991_v0, %v1316_v15 }
 0x23b   :  { %821 = vst [vmem:[%s1476_s3 + $0x68] sm:$0xff] %v805_v50  ;;  %v790_v8 = vmul.f32 %v774_v32, %v758_v21 }
 0x23c   :  { %v993_v27 = vpop.eup %992 }
 0x23d   :  { %v806_v51 = vadd.f32 %v790_v8, %v742_v9  ;;  %v759_v52 = vsub.f32 1.0, %v993_v27  ;;  %v743_v13 = vmul.f32 %v993_v27, %v1321_v37 }
 0x23f   :  { %822 = vst [vmem:[%s1476_s3 + $0x70] sm:$0xff] %v806_v51  ;;  %v791_v20 = vmul.f32 %v775_v1, %v759_v52 }
 0x241   :  { %v807_v55 = vadd.f32 %v791_v20, %v743_v13 }
 0x243   :  { %823 = vst [vmem:[%s1476_s3 + $0x78] sm:$0xff] %v807_v55 }
 0x244   :  { %828 = vsyncpa [#allocation3], 1 }

// kernel: highway_forward_packed.1
= control target key start
LH: loop header
LB: loop body
LE: loop exit
PB: predicated region body
PF: predicated region fallthrough
CT: control target
= control target key end

     0   :  { %8 = vsyncpa [#allocation3], 0  ;;  %s1016_s12 = smov [#allocation2]   ;;  %s1473_s0 = inlined_call_operand.hbm [shape: f32[2,128,256], index: 0, kind: input, shape index: {}]   ;;  %s1474_s1 = inlined_call_operand.vmem [shape: f32[2,1,256], index: 1, kind: input, shape index: {}]   ;;  %s1475_s2 = inlined_call_operand.vmem [shape: f32[128,128], index: 2, kind: input, shape index: {}]   ;;  %s1476_s3 = inlined_call_operand.vmem [shape: f32[128,128], index: 3, kind: output, shape index: {}]  }
   0x1   :  { %s14_s13 = sshll.u32 %s1016_s12, 4  ;;  %s15_s13 = int_to_ptr.vmem [resolvable:$true] %s14_s13 }
   0x2   :  { %s1002_s14 = scalar_lea.vmem %s15_s13, 8192  ;;  %p1007_p1 = scmp.lt.s32.totalorder %s15_s13, %s15_s13 }
   0x3   :  { %p1003_p0 = scmp.ne.s32.totalorder %s15_s13, %s1002_s14  ;;  %p1008_p2 = scmp.lt.s32.totalorder %s1002_s14, %s1002_s14 }
   0x5   :  { %p1009_p3 = por %p1008_p2, %p1007_p1 }
   0x7   :  { %p1010_p4 = pnand %p1009_p3, %p1003_p0 }
   0x9   :  { %1013 = shalt.err (!%p1010_p4)
}
   0xa   :  { %s1017_s15 = smov 256   ;;  %s1018_s16 = smov 16  }
   0xb   :  { %20 = dma.hbm_to_vmem [thread:$0]  %s1473_s0, 8192, %s15_s13, [#allocation3], %s1017_s15, %s1017_s15, %s1018_s16  }
   0xc   :  { %1014 = dma.done.wait [#allocation3], 8192  }
   0xd   :  { %1015 = vsyncadd [#allocation3], 4294959104  ;;  %v1019_v0 = vmov 0.0   ;;  %v75_v1 = vld [vmem:[#allocation2 + $0xf8] sm:$0xff]  ;;  %v74_v2 = vld [vmem:[#allocation2 + $0xf0] sm:$0xff] }
   0xe   :  { %152 = vmatprep.mubr.f32.mxu0 %v1019_v0  ;;  %535 = vmatprep.mubr.f32.mxu1 %v1019_v0  ;;  %v73_v3 = vld [vmem:[#allocation2 + $0xe8] sm:$0xff]  ;;  %v72_v4 = vld [vmem:[#allocation2 + $0xe0] sm:$0xff]  ;;  %v71_v5 = vld [vmem:[#allocation2 + $0xd8] sm:$0xff] }
   0xf   :  { %88 = vmatprep.subr.mxu0 %v75_v1  ;;  %v70_v6 = vld [vmem:[#allocation2 + $0xd0] sm:$0xff]  ;;  %v69_v7 = vld [vmem:[#allocation2 + $0xc8] sm:$0xff]  ;;  %v68_v8 = vld [vmem:[#allocation2 + $0xc0] sm:$0xff] }
  0x10   :  { %89 = vmatpush1.msra.mxu0 %v74_v2  ;;  %v67_v9 = vld [vmem:[#allocation2 + $0xb8] sm:$0xff]  ;;  %v66_v10 = vld [vmem:[#allocation2 + $0xb0] sm:$0xff]  ;;  %v65_v11 = vld [vmem:[#allocation2 + $0xa8] sm:$0xff] }
  0x11   :  { %90 = vmatprep.subr.mxu0 %v73_v3  ;;  %v64_v12 = vld [vmem:[#allocation2 + $0xa0] sm:$0xff]  ;;  %v63_v13 = vld [vmem:[#allocation2 + $0x98] sm:$0xff]  ;;  %v62_v14 = vld [vmem:[#allocation2 + $0x90] sm:$0xff] }
  0x12   :  { %91 = vmatpush1.msra.mxu0 %v72_v4  ;;  %v61_v15 = vld [vmem:[#allocation2 + $0x88] sm:$0xff]  ;;  %v60_v16 = vld [vmem:[#allocation2 + $0x80] sm:$0xff]  ;;  %v59_v17 = vld [vmem:[#allocation2 + $0x78] sm:$0xff] }
  0x13   :  { %92 = vmatprep.subr.mxu0 %v71_v5  ;;  %v58_v18 = vld [vmem:[#allocation2 + $0x70] sm:$0xff]  ;;  %v57_v19 = vld [vmem:[#allocation2 + $0x68] sm:$0xff]  ;;  %v56_v20 = vld [vmem:[#allocation2 + $0x60] sm:$0xff] }
  0x14   :  { %93 = vmatpush1.msra.mxu0 %v70_v6  ;;  %v55_v21 = vld [vmem:[#allocation2 + $0x58] sm:$0xff]  ;;  %v54_v22 = vld [vmem:[#allocation2 + $0x50] sm:$0xff]  ;;  %v53_v23 = vld [vmem:[#allocation2 + $0x48] sm:$0xff] }
  0x15   :  { %94 = vmatprep.subr.mxu0 %v69_v7  ;;  %v52_v24 = vld [vmem:[#allocation2 + $0x40] sm:$0xff]  ;;  %v51_v25 = vld [vmem:[#allocation2 + $0x38] sm:$0xff]  ;;  %v50_v26 = vld [vmem:[#allocation2 + $0x30] sm:$0xff] }
  0x16   :  { %95 = vmatpush1.msra.mxu0 %v68_v8  ;;  %v49_v27 = vld [vmem:[#allocation2 + $0x28] sm:$0xff]  ;;  %v48_v28 = vld [vmem:[#allocation2 + $0x20] sm:$0xff]  ;;  %v47_v29 = vld [vmem:[#allocation2 + $0x18] sm:$0xff] }
  0x17   :  { %96 = vmatprep.subr.mxu0 %v67_v9  ;;  %v46_v30 = vld [vmem:[#allocation2 + $0x10] sm:$0xff]  ;;  %v45_v31 = vld [vmem:[#allocation2 + $0x8] sm:$0xff]  ;;  %v44_v32 = vld [vmem:[#allocation2] sm:$0xff] }
  0x18   :  { %97 = vmatpush1.msra.mxu0 %v66_v10  ;;  %v1048_v33 = vld [vmem:[%s1475_s2] sm:$0xff]  ;;  %v1055_v34 = vld [vmem:[%s1475_s2 + $0x8] sm:$0xff]  ;;  %v1062_v35 = vld [vmem:[%s1475_s2 + $0x10] sm:$0xff] }
  0x19   :  { %98 = vmatprep.subr.mxu0 %v65_v11  ;;  %v1069_v36 = vld [vmem:[%s1475_s2 + $0x18] sm:$0xff]  ;;  %v1076_v37 = vld [vmem:[%s1475_s2 + $0x20] sm:$0xff]  ;;  %v1083_v38 = vld [vmem:[%s1475_s2 + $0x28] sm:$0xff] }
  0x1a   :  { %99 = vmatpush1.msra.mxu0 %v64_v12  ;;  %v1090_v39 = vld [vmem:[%s1475_s2 + $0x30] sm:$0xff]  ;;  %v1097_v40 = vld [vmem:[%s1475_s2 + $0x38] sm:$0xff]  ;;  %v1104_v41 = vld [vmem:[%s1475_s2 + $0x40] sm:$0xff] }
  0x1b   :  { %100 = vmatprep.subr.mxu0 %v63_v13  ;;  %v1111_v42 = vld [vmem:[%s1475_s2 + $0x48] sm:$0xff]  ;;  %v1118_v43 = vld [vmem:[%s1475_s2 + $0x50] sm:$0xff]  ;;  %v1125_v44 = vld [vmem:[%s1475_s2 + $0x58] sm:$0xff] }
  0x1c   :  { %101 = vmatpush1.msra.mxu0 %v62_v14  ;;  %v1132_v45 = vld [vmem:[%s1475_s2 + $0x60] sm:$0xff]  ;;  %v1139_v46 = vld [vmem:[%s1475_s2 + $0x68] sm:$0xff]  ;;  %v1146_v47 = vld [vmem:[%s1475_s2 + $0x70] sm:$0xff] }
  0x1d   :  { %102 = vmatprep.subr.mxu0 %v61_v15  ;;  %v1153_v48 = vld [vmem:[%s1475_s2 + $0x78] sm:$0xff]  ;;  %v456_v50 = vld [vmem:[#allocation2 + $0x1f0] sm:$0xff]  ;;  %v455_v51 = vld [vmem:[#allocation2 + $0x1e8] sm:$0xff] }
  0x1e   :  { %103 = vmatpush1.msra.mxu0 %v60_v16  ;;  %v457_v49 = vld [vmem:[#allocation2 + $0x1f8] sm:$0xff]  ;;  %v454_v52 = vld [vmem:[#allocation2 + $0x1e0] sm:$0xff]  ;;  %v452_v54 = vld [vmem:[#allocation2 + $0x1d0] sm:$0xff] }
  0x1f   :  { %104 = vmatprep.subr.mxu0 %v59_v17  ;;  %471 = vmatprep.subr.mxu1 %v457_v49  ;;  %v453_v53 = vld [vmem:[#allocation2 + $0x1d8] sm:$0xff]  ;;  %v451_v55 = vld [vmem:[#allocation2 + $0x1c8] sm:$0xff]  ;;  %v450_v56 = vld [vmem:[#allocation2 + $0x1c0] sm:$0xff] }
  0x20   :  { %105 = vmatpush1.msra.mxu0 %v58_v18  ;;  %472 = vmatpush1.msra.mxu1 %v456_v50  ;;  %v449_v57 = vld [vmem:[#allocation2 + $0x1b8] sm:$0xff]  ;;  %v448_v58 = vld [vmem:[#allocation2 + $0x1b0] sm:$0xff]  ;;  %v447_v59 = vld [vmem:[#allocation2 + $0x1a8] sm:$0xff]  ;;  %v78_v18 = vlaneseq }
  0x21   :  { %106 = vmatprep.subr.mxu0 %v57_v19  ;;  %473 = vmatprep.subr.mxu1 %v455_v51  ;;  %v446_v60 = vld [vmem:[#allocation2 + $0x1a0] sm:$0xff]  ;;  %v445_v61 = vld [vmem:[#allocation2 + $0x198] sm:$0xff]  ;;  %v444_v62 = vld [vmem:[#allocation2 + $0x190] sm:$0xff] }
  0x22   :  { %107 = vmatpush1.msra.mxu0 %v56_v20  ;;  %474 = vmatpush1.msra.mxu1 %v454_v52  ;;  %v443_v63 = vld [vmem:[#allocation2 + $0x188] sm:$0xff]  ;;  %v442_v1 = vld [vmem:[#allocation2 + $0x180] sm:$0xff]  ;;  %v441_v2 = vld [vmem:[#allocation2 + $0x178] sm:$0xff]  ;;  %v1156_v19 = vshrl.u32 %v78_v18, 7 }
  0x23   :  { %108 = vmatprep.subr.mxu0 %v55_v21  ;;  %475 = vmatprep.subr.mxu1 %v453_v53  ;;  %v440_v3 = vld [vmem:[#allocation2 + $0x170] sm:$0xff]  ;;  %v439_v4 = vld [vmem:[#allocation2 + $0x168] sm:$0xff]  ;;  %v438_v5 = vld [vmem:[#allocation2 + $0x160] sm:$0xff] }
  0x24   :  { %109 = vmatpush1.msra.mxu0 %v54_v22  ;;  %476 = vmatpush1.msra.mxu1 %v452_v54  ;;  %v437_v6 = vld [vmem:[#allocation2 + $0x158] sm:$0xff]  ;;  %v436_v7 = vld [vmem:[#allocation2 + $0x150] sm:$0xff]  ;;  %v435_v8 = vld [vmem:[#allocation2 + $0x148] sm:$0xff]  ;;  %v84_v20 = vsub.s32 1, %v1156_v19 }
  0x25   :  { %110 = vmatprep.subr.mxu0 %v53_v23  ;;  %477 = vmatprep.subr.mxu1 %v451_v55  ;;  %v434_v9 = vld [vmem:[#allocation2 + $0x140] sm:$0xff]  ;;  %v433_v10 = vld [vmem:[#allocation2 + $0x138] sm:$0xff]  ;;  %v432_v11 = vld [vmem:[#allocation2 + $0x130] sm:$0xff] }
  0x26   :  { %111 = vmatpush1.msra.mxu0 %v52_v24  ;;  %478 = vmatpush1.msra.mxu1 %v450_v56  ;;  %v431_v12 = vld [vmem:[#allocation2 + $0x128] sm:$0xff]  ;;  %v430_v13 = vld [vmem:[#allocation2 + $0x120] sm:$0xff]  ;;  %v429_v14 = vld [vmem:[#allocation2 + $0x118] sm:$0xff] }
  0x27   :  { %112 = vmatprep.subr.mxu0 %v51_v25  ;;  %479 = vmatprep.subr.mxu1 %v449_v57  ;;  %v428_v15 = vld [vmem:[#allocation2 + $0x110] sm:$0xff]  ;;  %v427_v16 = vld [vmem:[#allocation2 + $0x108] sm:$0xff]  ;;  %v426_v17 = vld [vmem:[#allocation2 + $0x100] sm:$0xff] }
  0x28   :  { %113 = vmatpush1.msra.mxu0 %v50_v26  ;;  %480 = vmatpush1.msra.mxu1 %v448_v58  ;;  %v76_v21 = vld [vmem:[%s1474_s1] sm:$0x3] }
  0x29   :  { %114 = vmatprep.subr.mxu0 %v49_v27  ;;  %481 = vmatprep.subr.mxu1 %v447_v59  ;;  %v1164_v22 = vrot.slane %v76_v21, %v84_v20 }
  0x2a   :  { %115 = vmatpush1.msra.mxu0 %v48_v28  ;;  %482 = vmatpush1.msra.mxu1 %v446_v60 }
  0x2b   :  { %116 = vmatprep.subr.mxu0 %v47_v29  ;;  %483 = vmatprep.subr.mxu1 %v445_v61 }
  0x2c   :  { %117 = vmatpush1.msra.mxu0 %v46_v30  ;;  %484 = vmatpush1.msra.mxu1 %v444_v62 }
  0x2d   :  { %118 = vmatprep.subr.mxu0 %v45_v31  ;;  %485 = vmatprep.subr.mxu1 %v443_v63 }
  0x2e   :  { %119 = vmatpush1.msra.mxu0 %v44_v32  ;;  %486 = vmatpush1.msra.mxu1 %v442_v1 }
  0x2f   :  { %153 = vmatmul.mubr.f32.vlgmr.msra.gmra.mxu0 %v1048_v33  ;;  %487 = vmatprep.subr.mxu1 %v441_v2 }
  0x30   :  { %158 = vmatprep.mubr.f32.mxu0 %v1019_v0  ;;  %488 = vmatpush1.msra.mxu1 %v440_v3  ;;  %v80_v3 = vsub.s32 0, %v1156_v19 }
  0x31   :  { %489 = vmatprep.subr.mxu1 %v439_v4 }
  0x32   :  { %490 = vmatpush1.msra.mxu1 %v438_v5 }
  0x33   :  { %159 = vmatmul.mubr.f32.gmra.mxu0 %v1055_v34  ;;  %491 = vmatprep.subr.mxu1 %v437_v6 }
  0x34   :  { %164 = vmatprep.mubr.f32.mxu0 %v1019_v0  ;;  %492 = vmatpush1.msra.mxu1 %v436_v7 }
  0x35   :  { %493 = vmatprep.subr.mxu1 %v435_v8 }
  0x36   :  { %494 = vmatpush1.msra.mxu1 %v434_v9 }
  0x37   :  { %165 = vmatmul.mubr.f32.gmra.mxu0 %v1062_v35  ;;  %495 = vmatprep.subr.mxu1 %v433_v10  ;;  %v1188_v10 = vrot.slane %v76_v21, %v80_v3 }
  0x38   :  { %170 = vmatprep.mubr.f32.mxu0 %v1019_v0  ;;  %496 = vmatpush1.msra.mxu1 %v432_v11 }
  0x39   :  { %497 = vmatprep.subr.mxu1 %v431_v12 }
  0x3a   :  { %498 = vmatpush1.msra.mxu1 %v430_v13 }
  0x3b   :  { %171 = vmatmul.mubr.f32.gmra.mxu0 %v1069_v36  ;;  %499 = vmatprep.subr.mxu1 %v429_v14 }
  0x3c   :  { %176 = vmatprep.mubr.f32.mxu0 %v1019_v0  ;;  %500 = vmatpush1.msra.mxu1 %v428_v15 }
  0x3d   :  { %501 = vmatprep.subr.mxu1 %v427_v16 }
  0x3e   :  { %502 = vmatpush1.msra.mxu1 %v426_v17 }
  0x3f   :  { %177 = vmatmul.mubr.f32.gmra.mxu0 %v1076_v37 }
  0x40   :  { %182 = vmatprep.mubr.f32.mxu0 %v1019_v0 }
  0x43   :  { %183 = vmatmul.mubr.f32.gmra.mxu0 %v1083_v38 }
  0x44   :  { %188 = vmatprep.mubr.f32.mxu0 %v1019_v0 }
  0x47   :  { %189 = vmatmul.mubr.f32.gmra.mxu0 %v1090_v39 }
  0x48   :  { %194 = vmatprep.mubr.f32.mxu0 %v1019_v0 }
  0x4b   :  { %195 = vmatmul.mubr.f32.gmra.mxu0 %v1097_v40 }
  0x4c   :  { %200 = vmatprep.mubr.f32.mxu0 %v1019_v0 }
  0x4f   :  { %201 = vmatmul.mubr.f32.gmra.mxu0 %v1104_v41 }
  0x50   :  { %206 = vmatprep.mubr.f32.mxu0 %v1019_v0 }
  0x53   :  { %207 = vmatmul.mubr.f32.gmra.mxu0 %v1111_v42 }
  0x54   :  { %212 = vmatprep.mubr.f32.mxu0 %v1019_v0 }
  0x57   :  { %213 = vmatmul.mubr.f32.gmra.mxu0 %v1118_v43 }
  0x58   :  { %218 = vmatprep.mubr.f32.mxu0 %v1019_v0 }
  0x5b   :  { %219 = vmatmul.mubr.f32.gmra.mxu0 %v1125_v44 }
  0x5c   :  { %224 = vmatprep.mubr.f32.mxu0 %v1019_v0 }
  0x5f   :  { %225 = vmatmul.mubr.f32.gmra.mxu0 %v1132_v45 }
  0x60   :  { %230 = vmatprep.mubr.f32.mxu0 %v1019_v0 }
  0x63   :  { %231 = vmatmul.mubr.f32.gmra.mxu0 %v1139_v46 }
  0x64   :  { %236 = vmatprep.mubr.f32.mxu0 %v1019_v0 }
  0x67   :  { %237 = vmatmul.mubr.f32.gmra.mxu0 %v1146_v47 }
  0x68   :  { %242 = vmatprep.mubr.f32.mxu0 %v1019_v0 }
  0x6b   :  { %243 = vmatmul.mubr.f32.gmra.mxu0 %v1153_v48 }
  0xef   :  { %v154_v23 = vpop.f32.mrf.mxu0 }
  0xf0   :  { %v155_v17 = vadd.f32 %v154_v23, %v1188_v10 }
  0xf1   :  { %v156_v24 = vpop.f32.mrf.mxu0 }
  0xf2   :  { %v157_v25 = vadd.f32 %v156_v24, %v1164_v22 }
  0xf3   :  { %v160_v26 = vpop.f32.mrf.mxu0 }
  0xf4   :  { %v829_v27 = vmul.f32 -1.442695, %v157_v25 }
  0xf5   :  { %v162_v28 = vpop.f32.mrf.mxu0 }
  0xf6   :  { %866 = vpow2.f32 %v829_v27  ;;  %v163_v29 = vadd.f32 %v162_v28, %v1164_v22 }
  0xf7   :  { %v1168_v30 = vpop.f32.mrf.mxu0 }
  0xf8   :  { %v830_v31 = vmul.f32 -1.442695, %v163_v29 }
  0xf9   :  { %v168_v32 = vpop.f32.mrf.mxu0 }
  0xfa   :  { %868 = vpow2.f32 %v830_v31  ;;  %v169_v49 = vadd.f32 %v168_v32, %v1164_v22  ;;  %v377_v31 = vmax.f32 %v155_v17, 0.0 }
  0xfb   :  { %v1171_v50 = vpop.f32.mrf.mxu0 }
  0xfc   :  { %v831_v51 = vmul.f32 -1.442695, %v169_v49 }
  0xfd   :  { %v174_v52 = vpop.f32.mrf.mxu0 }
  0xfe   :  { %870 = vpow2.f32 %v831_v51  ;;  %v175_v53 = vadd.f32 %v174_v52, %v1164_v22  ;;  %v161_v51 = vadd.f32 %v160_v26, %v1188_v10 }
  0xff   :  { %v1174_v54 = vpop.f32.mrf.mxu0 }
 0x100   :  { %v832_v55 = vmul.f32 -1.442695, %v175_v53  ;;  %v378_v26 = vmax.f32 %v161_v51, 0.0  ;;  %v179_v51 = vadd.f32 %v1174_v54, %v1188_v10 }
 0x101   :  { %v180_v56 = vpop.f32.mrf.mxu0 }
 0x102   :  { %872 = vpow2.f32 %v832_v55  ;;  %v181_v57 = vadd.f32 %v180_v56, %v1164_v22  ;;  %v381_v54 = vmax.f32 %v179_v51, 0.0 }
 0x103   :  { %v867_v58 = vpop.eup %866  ;;  %v1177_v59 = vpop.f32.mrf.mxu0 }
 0x104   :  { %v297_v60 = vadd.f32 1.0, %v867_v58  ;;  %v833_v61 = vmul.f32 -1.442695, %v181_v57 }
 0x105   :  { %v186_v62 = vpop.f32.mrf.mxu0 }
 0x106   :  { %874 = vrcp.f32 %v297_v60  ;;  %v187_v63 = vadd.f32 %v186_v62, %v1164_v22 }
 0x107   :  { %v869_v1 = vpop.eup %868  ;;  %876 = vpow2.f32 %v833_v61  ;;  %v1180_v2 = vpop.f32.mrf.mxu0  ;;  %v167_v61 = vadd.f32 %v1168_v30, %v1188_v10 }
 0x108   :  { %v298_v4 = vadd.f32 1.0, %v869_v1  ;;  %v834_v5 = vmul.f32 -1.442695, %v187_v63 }
 0x109   :  { %v192_v6 = vpop.f32.mrf.mxu0 }
 0x10a   :  { %878 = vrcp.f32 %v298_v4  ;;  %v193_v7 = vadd.f32 %v192_v6, %v1164_v22 }
 0x10b   :  { %v871_v8 = vpop.eup %870  ;;  %880 = vpow2.f32 %v834_v5  ;;  %v1184_v9 = vpop.f32.mrf.mxu0 }
 0x10c   :  { %v299_v11 = vadd.f32 1.0, %v871_v8  ;;  %v835_v12 = vmul.f32 -1.442695, %v193_v7 }
 0x10d   :  { %v198_v13 = vpop.f32.mrf.mxu0 }
 0x10e   :  { %882 = vrcp.f32 %v299_v11  ;;  %v199_v14 = vadd.f32 %v198_v13, %v1164_v22 }
 0x10f   :  { %v873_v15 = vpop.eup %872  ;;  %884 = vpow2.f32 %v835_v12  ;;  %v1191_v16 = vpop.f32.mrf.mxu0  ;;  %v379_v12 = vmax.f32 %v167_v61, 0.0 }
 0x110   :  { %v300_v18 = vadd.f32 1.0, %v873_v15  ;;  %v836_v24 = vmul.f32 -1.442695, %v199_v14  ;;  %v173_v15 = vadd.f32 %v1171_v50, %v1188_v10 }
 0x111   :  { %v204_v25 = vpop.f32.mrf.mxu0 }
 0x112   :  { %886 = vrcp.f32 %v300_v18  ;;  %v205_v27 = vadd.f32 %v204_v25, %v1164_v22 }
 0x113   :  { %v875_v21 = vpop.eup %874  ;;  %888 = vpow2.f32 %v836_v24  ;;  %v1195_v28 = vpop.f32.mrf.mxu0 }
 0x114   :  { %v877_v29 = vpop.eup %876  ;;  %v837_v32 = vmul.f32 -1.442695, %v205_v27  ;;  %v361_v49 = vsub.f32 1.0, %v875_v21  ;;  %v345_v55 = vmul.f32 %v875_v21, %v1048_v33 }
 0x115   :  { %v301_v52 = vadd.f32 1.0, %v877_v29  ;;  %v210_v53 = vpop.f32.mrf.mxu0 }
 0x116   :  { %890 = vpow2.f32 %v837_v32  ;;  %v211_v23 = vadd.f32 %v210_v53, %v1164_v22  ;;  %v393_v56 = vmul.f32 %v377_v31, %v361_v49  ;;  %v380_v49 = vmax.f32 %v173_v15, 0.0 }
 0x117   :  { %v879_v57 = vpop.eup %878  ;;  %892 = vrcp.f32 %v301_v52  ;;  %v1200_v58 = vpop.f32.mrf.mxu0  ;;  %v191_v15 = vadd.f32 %v1180_v2, %v1188_v10 }
 0x118   :  { %v881_v60 = vpop.eup %880  ;;  %v838_v62 = vmul.f32 -1.442695, %v211_v23  ;;  %v1204_v63 = vadd.f32 %v393_v56, %v345_v55  ;;  %v362_v5 = vsub.f32 1.0, %v879_v57  ;;  %v346_v30 = vmul.f32 %v879_v57, %v1055_v34 }
 0x119   :  { %v302_v1 = vadd.f32 1.0, %v881_v60  ;;  %v216_v4 = vpop.f32.mrf.mxu0  ;;  %v383_v2 = vmax.f32 %v191_v15, 0.0 }
 0x11a   :  { %894 = vpow2.f32 %v838_v62  ;;  %v217_v6 = vadd.f32 %v216_v4, %v1164_v22  ;;  %536 = vmatmul.mubr.f32.vlgmr.msra.gmra.mxu1 %v1204_v63  ;;  %v394_v8 = vmul.f32 %v378_v26, %v362_v5 }
 0x11b   :  { %v883_v33 = vpop.eup %882  ;;  %896 = vrcp.f32 %v302_v1  ;;  %v1208_v7 = vpop.f32.mrf.mxu0  ;;  %541 = vmatprep.mubr.f32.mxu1 %v1019_v0  ;;  %v185_v1 = vadd.f32 %v1177_v59, %v1188_v10 }
 0x11c   :  { %v885_v11 = vpop.eup %884  ;;  %v839_v13 = vmul.f32 -1.442695, %v217_v6  ;;  %v363_v14 = vsub.f32 1.0, %v883_v33  ;;  %v1214_v24 = vadd.f32 %v394_v8, %v346_v30  ;;  %v347_v27 = vmul.f32 %v883_v33, %v1062_v35 }
 0x11d   :  { %v303_v17 = vadd.f32 1.0, %v885_v11  ;;  %v222_v18 = vpop.f32.mrf.mxu0  ;;  %v382_v59 = vmax.f32 %v185_v1, 0.0 }
 0x11e   :  { %898 = vpow2.f32 %v839_v13  ;;  %v223_v25 = vadd.f32 %v222_v18, %v1164_v22  ;;  %v395_v21 = vmul.f32 %v379_v12, %v363_v14  ;;  %542 = vmatmul.mubr.f32.gmra.mxu1 %v1214_v24 }
 0x11f   :  { %v887_v29 = vpop.eup %886  ;;  %900 = vrcp.f32 %v303_v17  ;;  %v1219_v34 = vpop.f32.mrf.mxu0  ;;  %547 = vmatprep.mubr.f32.mxu1 %v1019_v0 }
 0x120   :  { %v889_v31 = vpop.eup %888  ;;  %v840_v32 = vmul.f32 -1.442695, %v223_v25  ;;  %v1222_v50 = vadd.f32 %v395_v21, %v347_v27  ;;  %v364_v35 = vsub.f32 1.0, %v887_v29  ;;  %v348_v57 = vmul.f32 %v887_v29, %v1069_v36 }
 0x121   :  { %v304_v52 = vadd.f32 1.0, %v889_v31  ;;  %v228_v53 = vpop.f32.mrf.mxu0 }
 0x122   :  { %902 = vpow2.f32 %v840_v32  ;;  %v229_v23 = vadd.f32 %v228_v53, %v1164_v22  ;;  %548 = vmatmul.mubr.f32.gmra.mxu1 %v1222_v50  ;;  %v396_v60 = vmul.f32 %v380_v49, %v364_v35 }
 0x123   :  { %v891_v55 = vpop.eup %890  ;;  %904 = vrcp.f32 %v304_v52  ;;  %v1228_v56 = vpop.f32.mrf.mxu0  ;;  %553 = vmatprep.mubr.f32.mxu1 %v1019_v0  ;;  %v197_v52 = vadd.f32 %v1184_v9, %v1188_v10 }
 0x124   :  { %v893_v61 = vpop.eup %892  ;;  %v305_v62 = vadd.f32 1.0, %v891_v55  ;;  %v841_v26 = vmul.f32 -1.442695, %v229_v23  ;;  %v1234_v5 = vadd.f32 %v396_v60, %v348_v57 }
 0x125   :  { %v234_v4 = vpop.f32.mrf.mxu0  ;;  %v365_v6 = vsub.f32 1.0, %v893_v61  ;;  %v349_v8 = vmul.f32 %v893_v61, %v1076_v37 }
 0x126   :  { %906 = vrcp.f32 %v305_v62  ;;  %v235_v33 = vadd.f32 %v234_v4, %v1164_v22  ;;  %554 = vmatmul.mubr.f32.gmra.mxu1 %v1234_v5  ;;  %v203_v62 = vadd.f32 %v1191_v16, %v1188_v10  ;;  %v209_v16 = vadd.f32 %v1195_v28, %v1188_v10 }
 0x127   :  { %v895_v30 = vpop.eup %894  ;;  %908 = vpow2.f32 %v841_v26  ;;  %v1238_v36 = vpop.f32.mrf.mxu0  ;;  %v397_v11 = vmul.f32 %v381_v54, %v365_v6  ;;  %559 = vmatprep.mubr.f32.mxu1 %v1019_v0  ;;  %v384_v54 = vmax.f32 %v197_v52, 0.0 }
 0x128   :  { %v897_v12 = vpop.eup %896  ;;  %v306_v13 = vadd.f32 1.0, %v895_v30  ;;  %v842_v14 = vmul.f32 -1.442695, %v235_v33  ;;  %v385_v30 = vmax.f32 %v203_v62, 0.0  ;;  %v386_v15 = vmax.f32 %v209_v16, 0.0 }
 0x129   :  { %v240_v17 = vpop.f32.mrf.mxu0  ;;  %v1244_v18 = vadd.f32 %v397_v11, %v349_v8  ;;  %v366_v25 = vsub.f32 1.0, %v897_v12  ;;  %v350_v29 = vmul.f32 %v897_v12, %v1083_v38 }
 0x12a   :  { %910 = vrcp.f32 %v306_v13  ;;  %v241_v27 = vadd.f32 %v240_v17, %v1164_v22  ;;  %v215_v17 = vadd.f32 %v1200_v58, %v1188_v10 }
 0x12b   :  { %v899_v21 = vpop.eup %898  ;;  %912 = vpow2.f32 %v842_v14  ;;  %560 = vmatmul.mubr.f32.gmra.mxu1 %v1244_v18  ;;  %v1248_v37 = vpop.f32.mrf.mxu0  ;;  %v398_v31 = vmul.f32 %v382_v59, %v366_v25 }
 0x12c   :  { %v901_v32 = vpop.eup %900  ;;  %v307_v49 = vadd.f32 1.0, %v899_v21  ;;  %v843_v51 = vmul.f32 -1.442695, %v241_v27  ;;  %565 = vmatprep.mubr.f32.mxu1 %v1019_v0 }
 0x12d   :  { %v246_v53 = vpop.f32.mrf.mxu0  ;;  %v1254_v35 = vadd.f32 %v398_v31, %v350_v29  ;;  %v367_v23 = vsub.f32 1.0, %v901_v32  ;;  %v351_v38 = vmul.f32 %v901_v32, %v1090_v39  ;;  %v387_v32 = vmax.f32 %v215_v17, 0.0 }
 0x12e   :  { %914 = vrcp.f32 %v307_v49  ;;  %v247_v55 = vadd.f32 %v246_v53, %v1164_v22  ;;  %v221_v49 = vadd.f32 %v1208_v7, %v1188_v10 }
 0x12f   :  { %v903_v57 = vpop.eup %902  ;;  %916 = vpow2.f32 %v843_v51  ;;  %566 = vmatmul.mubr.f32.gmra.mxu1 %v1254_v35  ;;  %v399_v60 = vmul.f32 %v383_v2, %v367_v23 }
 0x130   :  { %v905_v61 = vpop.eup %904  ;;  %v308_v26 = vadd.f32 1.0, %v903_v57  ;;  %v844_v9 = vmul.f32 -1.442695, %v247_v55  ;;  %571 = vmatprep.mubr.f32.mxu1 %v1019_v0  ;;  %v388_v55 = vmax.f32 %v221_v49, 0.0 }
 0x131   :  { %v1262_v1 = vadd.f32 %v399_v60, %v351_v38  ;;  %v368_v4 = vsub.f32 1.0, %v905_v61  ;;  %v352_v39 = vmul.f32 %v905_v61, %v1097_v40  ;;  %v227_v38 = vadd.f32 %v1219_v34, %v1188_v10 }
 0x132   :  { %918 = vrcp.f32 %v308_v26 }
 0x133   :  { %v907_v22 = vpop.eup %906  ;;  %920 = vpow2.f32 %v844_v9  ;;  %572 = vmatmul.mubr.f32.gmra.mxu1 %v1262_v1  ;;  %v400_v6 = vmul.f32 %v384_v54, %v368_v4  ;;  %v389_v9 = vmax.f32 %v227_v38, 0.0  ;;  %v233_v54 = vadd.f32 %v1228_v56, %v1188_v10 }
 0x134   :  { %v909_v33 = vpop.eup %908  ;;  %577 = vmatprep.mubr.f32.mxu1 %v1019_v0  ;;  %v369_v8 = vsub.f32 1.0, %v907_v22  ;;  %v353_v13 = vmul.f32 %v907_v22, %v1104_v41 }
 0x135   :  { %v309_v11 = vadd.f32 1.0, %v909_v33  ;;  %v1269_v12 = vadd.f32 %v400_v6, %v352_v39  ;;  %v390_v39 = vmax.f32 %v233_v54, 0.0  ;;  %v239_v6 = vadd.f32 %v1238_v36, %v1188_v10 }
 0x136   :  { %v401_v14 = vmul.f32 %v385_v30, %v369_v8 }
 0x137   :  { %v911_v59 = vpop.eup %910  ;;  %922 = vrcp.f32 %v309_v11  ;;  %578 = vmatmul.mubr.f32.gmra.mxu1 %v1269_v12  ;;  %v245_v11 = vadd.f32 %v1248_v37, %v1188_v10 }
 0x138   :  { %v913_v40 = vpop.eup %912  ;;  %583 = vmatprep.mubr.f32.mxu1 %v1019_v0  ;;  %v1276_v28 = vadd.f32 %v401_v14, %v353_v13  ;;  %v370_v25 = vsub.f32 1.0, %v911_v59  ;;  %v354_v21 = vmul.f32 %v911_v59, %v1111_v42 }
 0x139   :  { %v310_v27 = vadd.f32 1.0, %v913_v40 }
 0x13a   :  { %v402_v29 = vmul.f32 %v386_v15, %v370_v25 }
 0x13b   :  { %v915_v41 = vpop.eup %914  ;;  %924 = vrcp.f32 %v310_v27  ;;  %584 = vmatmul.mubr.f32.gmra.mxu1 %v1276_v28 }
 0x13c   :  { %v917_v31 = vpop.eup %916  ;;  %589 = vmatprep.mubr.f32.mxu1 %v1019_v0  ;;  %v1283_v58 = vadd.f32 %v402_v29, %v354_v21  ;;  %v371_v51 = vsub.f32 1.0, %v915_v41  ;;  %v355_v52 = vmul.f32 %v915_v41, %v1118_v43 }
 0x13d   :  { %v311_v2 = vadd.f32 1.0, %v917_v31 }
 0x13e   :  { %v403_v53 = vmul.f32 %v387_v32, %v371_v51 }
 0x13f   :  { %v919_v42 = vpop.eup %918  ;;  %926 = vrcp.f32 %v311_v2  ;;  %590 = vmatmul.mubr.f32.gmra.mxu1 %v1283_v58 }
 0x140   :  { %v921_v23 = vpop.eup %920  ;;  %595 = vmatprep.mubr.f32.mxu1 %v1019_v0  ;;  %v1288_v57 = vadd.f32 %v403_v53, %v355_v52  ;;  %v372_v7 = vsub.f32 1.0, %v919_v42  ;;  %v356_v61 = vmul.f32 %v919_v42, %v1125_v44 }
 0x141   :  { %v312_v60 = vadd.f32 1.0, %v921_v23 }
 0x142   :  { %v404_v62 = vmul.f32 %v388_v55, %v372_v7 }
 0x143   :  { %928 = vrcp.f32 %v312_v60  ;;  %596 = vmatmul.mubr.f32.gmra.mxu1 %v1288_v57 }
 0x144   :  { %v923_v43 = vpop.eup %922  ;;  %601 = vmatprep.mubr.f32.mxu1 %v1019_v0  ;;  %v1295_v26 = vadd.f32 %v404_v62, %v356_v61 }
 0x145   :  { %v373_v4 = vsub.f32 1.0, %v923_v43  ;;  %v357_v34 = vmul.f32 %v923_v43, %v1132_v45  ;;  %v391_v45 = vmax.f32 %v239_v6, 0.0 }
 0x147   :  { %602 = vmatmul.mubr.f32.gmra.mxu1 %v1295_v26  ;;  %v405_v22 = vmul.f32 %v389_v9, %v373_v4 }
 0x148   :  { %v925_v44 = vpop.eup %924  ;;  %607 = vmatprep.mubr.f32.mxu1 %v1019_v0 }
 0x149   :  { %v1304_v33 = vadd.f32 %v405_v22, %v357_v34  ;;  %v374_v30 = vsub.f32 1.0, %v925_v44  ;;  %v358_v56 = vmul.f32 %v925_v44, %v1139_v46  ;;  %v392_v46 = vmax.f32 %v245_v11, 0.0 }
 0x14b   :  { %608 = vmatmul.mubr.f32.gmra.mxu1 %v1304_v33  ;;  %v406_v16 = vmul.f32 %v390_v39, %v374_v30 }
 0x14c   :  { %v927_v8 = vpop.eup %926  ;;  %613 = vmatprep.mubr.f32.mxu1 %v1019_v0 }
 0x14d   :  { %v1311_v13 = vadd.f32 %v406_v16, %v358_v56  ;;  %v375_v14 = vsub.f32 1.0, %v927_v8  ;;  %v359_v36 = vmul.f32 %v927_v8, %v1146_v47  ;;  %v845_v47 = vld [vmem:[%s1474_s1 + $0x2] sm:$0x3] }
 0x14e   :  { %v1329_v27 = vrot.slane %v845_v47, %v84_v20  ;;  %v1350_v16 = vrot.slane %v845_v47, %v80_v3 }
 0x14f   :  { %614 = vmatmul.mubr.f32.gmra.mxu1 %v1311_v13  ;;  %v407_v59 = vmul.f32 %v391_v45, %v375_v14 }
 0x150   :  { %v929_v40 = vpop.eup %928  ;;  %619 = vmatprep.mubr.f32.mxu1 %v1019_v0 }
 0x151   :  { %v1316_v15 = vadd.f32 %v407_v59, %v359_v36  ;;  %v376_v17 = vsub.f32 1.0, %v929_v40  ;;  %v360_v25 = vmul.f32 %v929_v40, %v1153_v48 }
 0x153   :  { %620 = vmatmul.mubr.f32.gmra.mxu1 %v1316_v15  ;;  %v408_v10 = vmul.f32 %v392_v46, %v376_v17 }
 0x154   :  { %625 = vmatprep.mubr.f32.mxu1 %v1019_v0 }
 0x155   :  { %v1321_v37 = vadd.f32 %v408_v10, %v360_v25 }
 0x157   :  { %626 = vmatmul.mubr.f32.gmra.mxu1 %v1321_v37 }
 0x1da   :  { %v537_v21 = vpop.f32.mrf.mxu1 }
 0x1db   :  { %v538_v40 = vadd.f32 %v537_v21, %v1350_v16 }
 0x1dc   :  { %v539_v29 = vpop.f32.mrf.mxu1 }
 0x1dd   :  { %v540_v41 = vadd.f32 %v539_v29, %v1329_v27  ;;  %v760_v29 = vmax.f32 %v538_v40, 0.0 }
 0x1de   :  { %v543_v31 = vpop.f32.mrf.mxu1 }
 0x1df   :  { %v846_v48 = vmul.f32 -1.442695, %v540_v41 }
 0x1e0   :  { %v545_v0 = vpop.f32.mrf.mxu1 }
 0x1e1   :  { %930 = vpow2.f32 %v846_v48  ;;  %v546_v32 = vadd.f32 %v545_v0, %v1329_v27  ;;  %v544_v0 = vadd.f32 %v543_v31, %v1350_v16 }
 0x1e2   :  { %v1333_v49 = vpop.f32.mrf.mxu1 }
 0x1e3   :  { %v847_v51 = vmul.f32 -1.442695, %v546_v32  ;;  %v550_v31 = vadd.f32 %v1333_v49, %v1350_v16 }
 0x1e4   :  { %v551_v2 = vpop.f32.mrf.mxu1 }
 0x1e5   :  { %932 = vpow2.f32 %v847_v51  ;;  %v552_v52 = vadd.f32 %v551_v2, %v1329_v27 }
 0x1e6   :  { %v1336_v53 = vpop.f32.mrf.mxu1 }
 0x1e7   :  { %v848_v20 = vmul.f32 -1.442695, %v552_v52 }
 0x1e8   :  { %v557_v42 = vpop.f32.mrf.mxu1 }
 0x1e9   :  { %934 = vpow2.f32 %v848_v20  ;;  %v558_v23 = vadd.f32 %v557_v42, %v1329_v27 }
 0x1eb   :  { %v1339_v55 = vpop.f32.mrf.mxu1  ;;  %v849_v7 = vmul.f32 -1.442695, %v558_v23 }
 0x1ed   :  { %v563_v38 = vpop.f32.mrf.mxu1  ;;  %936 = vpow2.f32 %v849_v7 }
 0x1ee   :  { %v931_v60 = vpop.eup %930  ;;  %v564_v61 = vadd.f32 %v563_v38, %v1329_v27 }
 0x1ef   :  { %v680_v62 = vadd.f32 1.0, %v931_v60  ;;  %v1342_v43 = vpop.f32.mrf.mxu1  ;;  %v761_v60 = vmax.f32 %v544_v0, 0.0 }
 0x1f0   :  { %v850_v9 = vmul.f32 -1.442695, %v564_v61 }
 0x1f1   :  { %938 = vrcp.f32 %v680_v62  ;;  %v569_v54 = vpop.f32.mrf.mxu1 }
 0x1f2   :  { %940 = vpow2.f32 %v850_v9  ;;  %v570_v4 = vadd.f32 %v569_v54, %v1329_v27  ;;  %v933_v34 = vpop.eup %932 }
 0x1f3   :  { %v1345_v22 = vpop.f32.mrf.mxu1  ;;  %v681_v44 = vadd.f32 1.0, %v933_v34 }
 0x1f4   :  { %v851_v39 = vmul.f32 -1.442695, %v570_v4 }
 0x1f5   :  { %v575_v6 = vpop.f32.mrf.mxu1  ;;  %942 = vrcp.f32 %v681_v44 }
 0x1f6   :  { %v576_v30 = vadd.f32 %v575_v6, %v1329_v27  ;;  %v935_v56 = vpop.eup %934  ;;  %944 = vpow2.f32 %v851_v39  ;;  %v556_v39 = vadd.f32 %v1336_v53, %v1350_v16 }
 0x1f7   :  { %v1352_v8 = vpop.f32.mrf.mxu1  ;;  %v682_v45 = vadd.f32 1.0, %v935_v56  ;;  %v762_v56 = vmax.f32 %v550_v31, 0.0 }
 0x1f8   :  { %v852_v11 = vmul.f32 -1.442695, %v576_v30 }
 0x1f9   :  { %v581_v14 = vpop.f32.mrf.mxu1  ;;  %946 = vrcp.f32 %v682_v45 }
 0x1fa   :  { %v582_v36 = vadd.f32 %v581_v14, %v1329_v27  ;;  %v937_v59 = vpop.eup %936  ;;  %948 = vpow2.f32 %v852_v11 }
 0x1fb   :  { %v1356_v46 = vpop.f32.mrf.mxu1  ;;  %v683_v17 = vadd.f32 1.0, %v937_v59 }
 0x1fc   :  { %v853_v25 = vmul.f32 -1.442695, %v582_v36 }
 0x1fd   :  { %v587_v19 = vpop.f32.mrf.mxu1  ;;  %950 = vrcp.f32 %v683_v17  ;;  %v763_v17 = vmax.f32 %v556_v39, 0.0 }
 0x1fe   :  { %v939_v3 = vpop.eup %938  ;;  %v588_v10 = vadd.f32 %v587_v19, %v1329_v27  ;;  %952 = vpow2.f32 %v853_v25 }
 0x1ff   :  { %v941_v47 = vpop.eup %940  ;;  %v744_v41 = vsub.f32 1.0, %v939_v3  ;;  %v1359_v48 = vpop.f32.mrf.mxu1  ;;  %v728_v51 = vmul.f32 %v939_v3, %v1204_v63 }
 0x200   :  { %v684_v32 = vadd.f32 1.0, %v941_v47  ;;  %v854_v21 = vmul.f32 -1.442695, %v588_v10  ;;  %v562_v47 = vadd.f32 %v1339_v55, %v1350_v16 }
 0x201   :  { %v776_v2 = vmul.f32 %v760_v29, %v744_v41  ;;  %v593_v52 = vpop.f32.mrf.mxu1 }
 0x202   :  { %954 = vrcp.f32 %v684_v32  ;;  %v594_v20 = vadd.f32 %v593_v52, %v1329_v27  ;;  %v943_v42 = vpop.eup %942  ;;  %v764_v55 = vmax.f32 %v562_v47, 0.0 }
 0x203   :  { %v792_v23 = vadd.f32 %v776_v2, %v728_v51  ;;  %956 = vpow2.f32 %v854_v21  ;;  %v1364_v7 = vpop.f32.mrf.mxu1  ;;  %v945_v38 = vpop.eup %944  ;;  %v745_v61 = vsub.f32 1.0, %v943_v42  ;;  %v729_v54 = vmul.f32 %v943_v42, %v1214_v24 }
 0x204   :  { %v855_v62 = vmul.f32 -1.442695, %v594_v20  ;;  %v685_v63 = vadd.f32 1.0, %v945_v38  ;;  %v568_v38 = vadd.f32 %v1342_v43, %v1350_v16 }
 0x205   :  { %808 = vst [vmem:[%s1476_s3] sm:$0xff] %v792_v23  ;;  %v599_v9 = vpop.f32.mrf.mxu1  ;;  %v777_v4 = vmul.f32 %v761_v60, %v745_v61 }
 0x206   :  { %958 = vpow2.f32 %v855_v62  ;;  %v600_v34 = vadd.f32 %v599_v9, %v1329_v27  ;;  %v947_v44 = vpop.eup %946 }
 0x207   :  { %960 = vrcp.f32 %v685_v63  ;;  %v1375_v6 = vpop.f32.mrf.mxu1  ;;  %v949_v49 = vpop.eup %948  ;;  %v793_v30 = vadd.f32 %v777_v4, %v729_v54  ;;  %v746_v45 = vsub.f32 1.0, %v947_v44  ;;  %v730_v24 = vmul.f32 %v947_v44, %v1222_v50 }
 0x208   :  { %v856_v11 = vmul.f32 -1.442695, %v600_v34  ;;  %v686_v14 = vadd.f32 1.0, %v949_v49  ;;  %v765_v44 = vmax.f32 %v568_v38, 0.0  ;;  %v574_v49 = vadd.f32 %v1345_v22, %v1350_v16 }
 0x209   :  { %v605_v36 = vpop.f32.mrf.mxu1  ;;  %809 = vst [vmem:[%s1476_s3 + $0x8] sm:$0xff] %v793_v30  ;;  %v778_v59 = vmul.f32 %v762_v56, %v746_v45 }
 0x20a   :  { %962 = vpow2.f32 %v856_v11  ;;  %v606_v53 = vadd.f32 %v605_v36, %v1329_v27  ;;  %v951_v40 = vpop.eup %950  ;;  %v766_v22 = vmax.f32 %v574_v49, 0.0  ;;  %v604_v49 = vadd.f32 %v1375_v6, %v1350_v16 }
 0x20b   :  { %964 = vrcp.f32 %v686_v14  ;;  %v1382_v25 = vpop.f32.mrf.mxu1  ;;  %v953_v19 = vpop.eup %952  ;;  %v794_v3 = vadd.f32 %v778_v59, %v730_v24  ;;  %v747_v10 = vsub.f32 1.0, %v951_v40  ;;  %v731_v50 = vmul.f32 %v951_v40, %v1234_v5 }
 0x20c   :  { %v857_v29 = vmul.f32 -1.442695, %v606_v53  ;;  %v687_v41 = vadd.f32 1.0, %v953_v19 }
 0x20d   :  { %v611_v0 = vpop.f32.mrf.mxu1  ;;  %810 = vst [vmem:[%s1476_s3 + $0x10] sm:$0xff] %v794_v3  ;;  %v779_v32 = vmul.f32 %v763_v17, %v747_v10  ;;  %v580_v17 = vadd.f32 %v1352_v8, %v1350_v16  ;;  %v586_v8 = vadd.f32 %v1356_v46, %v1350_v16 }
 0x20e   :  { %966 = vpow2.f32 %v857_v29  ;;  %v612_v21 = vadd.f32 %v611_v0, %v1329_v27 }
 0x20f   :  { %v955_v51 = vpop.eup %954  ;;  %968 = vrcp.f32 %v687_v41  ;;  %v1391_v2 = vpop.f32.mrf.mxu1  ;;  %v795_v20 = vadd.f32 %v779_v32, %v731_v50  ;;  %v767_v32 = vmax.f32 %v580_v17, 0.0 }
 0x210   :  { %v957_v52 = vpop.eup %956  ;;  %v748_v42 = vsub.f32 1.0, %v955_v51  ;;  %v858_v23 = vmul.f32 -1.442695, %v612_v21  ;;  %v732_v5 = vmul.f32 %v955_v51, %v1244_v18 }
 0x211   :  { %v688_v60 = vadd.f32 1.0, %v957_v52  ;;  %v617_v61 = vpop.f32.mrf.mxu1  ;;  %811 = vst [vmem:[%s1476_s3 + $0x18] sm:$0xff] %v795_v20  ;;  %v592_v20 = vadd.f32 %v1359_v48, %v1350_v16 }
 0x212   :  { %v780_v31 = vmul.f32 %v764_v55, %v748_v42  ;;  %970 = vpow2.f32 %v858_v23  ;;  %v618_v62 = vadd.f32 %v617_v61, %v1329_v27  ;;  %v768_v23 = vmax.f32 %v586_v8, 0.0 }
 0x213   :  { %v959_v63 = vpop.eup %958  ;;  %972 = vrcp.f32 %v688_v60  ;;  %v1400_v9 = vpop.f32.mrf.mxu1 }
 0x214   :  { %v961_v54 = vpop.eup %960  ;;  %v796_v4 = vadd.f32 %v780_v31, %v732_v5  ;;  %v689_v34 = vadd.f32 1.0, %v959_v63  ;;  %v859_v43 = vmul.f32 -1.442695, %v618_v62  ;;  %v769_v5 = vmax.f32 %v592_v20, 0.0 }
 0x215   :  { %v749_v39 = vsub.f32 1.0, %v961_v54  ;;  %v623_v30 = vpop.f32.mrf.mxu1  ;;  %v733_v45 = vmul.f32 %v961_v54, %v1254_v35  ;;  %v598_v62 = vadd.f32 %v1364_v7, %v1350_v16 }
 0x216   :  { %812 = vst [vmem:[%s1476_s3 + $0x20] sm:$0xff] %v796_v4  ;;  %974 = vrcp.f32 %v689_v34  ;;  %v624_v18 = vadd.f32 %v623_v30, %v1329_v27 }
 0x217   :  { %v963_v56 = vpop.eup %962  ;;  %v781_v11 = vmul.f32 %v765_v44, %v749_v39  ;;  %976 = vpow2.f32 %v859_v43  ;;  %v1409_v14 = vpop.f32.mrf.mxu1  ;;  %v770_v44 = vmax.f32 %v598_v62, 0.0 }
 0x218   :  { %v965_v36 = vpop.eup %964  ;;  %v690_v24 = vadd.f32 1.0, %v963_v56  ;;  %v860_v59 = vmul.f32 -1.442695, %v624_v18 }
 0x219   :  { %v797_v53 = vadd.f32 %v781_v11, %v733_v45  ;;  %v750_v40 = vsub.f32 1.0, %v965_v36  ;;  %v629_v19 = vpop.f32.mrf.mxu1  ;;  %v734_v35 = vmul.f32 %v965_v36, %v1262_v1  ;;  %v771_v11 = vmax.f32 %v604_v49, 0.0 }
 0x21a   :  { %978 = vrcp.f32 %v690_v24  ;;  %v630_v3 = vadd.f32 %v629_v19, %v1329_v27  ;;  %v610_v24 = vadd.f32 %v1382_v25, %v1350_v16  ;;  %v616_v19 = vadd.f32 %v1391_v2, %v1350_v16 }
 0x21b   :  { %v967_v10 = vpop.eup %966  ;;  %813 = vst [vmem:[%s1476_s3 + $0x28] sm:$0xff] %v797_v53  ;;  %v782_v47 = vmul.f32 %v766_v22, %v750_v40  ;;  %980 = vpow2.f32 %v860_v59 }
 0x21c   :  { %v969_v29 = vpop.eup %968  ;;  %v691_v41 = vadd.f32 1.0, %v967_v10  ;;  %v861_v0 = vmul.f32 -1.442695, %v630_v3  ;;  %v772_v40 = vmax.f32 %v610_v24, 0.0 }
 0x21d   :  { %v798_v50 = vadd.f32 %v782_v47, %v734_v35  ;;  %v751_v21 = vsub.f32 1.0, %v969_v29  ;;  %v735_v51 = vmul.f32 %v969_v29, %v1269_v12  ;;  %v773_v47 = vmax.f32 %v616_v19, 0.0 }
 0x21e   :  { %982 = vrcp.f32 %v691_v41  ;;  %v622_v29 = vadd.f32 %v1400_v9, %v1350_v16 }
 0x21f   :  { %v971_v27 = vpop.eup %970  ;;  %814 = vst [vmem:[%s1476_s3 + $0x30] sm:$0xff] %v798_v50  ;;  %v783_v1 = vmul.f32 %v767_v32, %v751_v21  ;;  %984 = vpow2.f32 %v861_v0 }
 0x220   :  { %v973_v52 = vpop.eup %972  ;;  %v692_v55 = vadd.f32 1.0, %v971_v27  ;;  %v774_v32 = vmax.f32 %v622_v29, 0.0 }
 0x221   :  { %v799_v42 = vadd.f32 %v783_v1, %v735_v51  ;;  %v752_v38 = vsub.f32 1.0, %v973_v52  ;;  %v736_v60 = vmul.f32 %v973_v52, %v1276_v28 }
 0x222   :  { %986 = vrcp.f32 %v692_v55 }
 0x223   :  { %v975_v46 = vpop.eup %974  ;;  %815 = vst [vmem:[%s1476_s3 + $0x38] sm:$0xff] %v799_v42  ;;  %v784_v61 = vmul.f32 %v768_v23, %v752_v38 }
 0x224   :  { %v977_v12 = vpop.eup %976  ;;  %v753_v31 = vsub.f32 1.0, %v975_v46  ;;  %v737_v54 = vmul.f32 %v975_v46, %v1283_v58 }
 0x225   :  { %v800_v48 = vadd.f32 %v784_v61, %v736_v60  ;;  %v693_v63 = vadd.f32 1.0, %v977_v12 }
 0x226   :  { %v785_v4 = vmul.f32 %v769_v5, %v753_v31 }
 0x227   :  { %v979_v34 = vpop.eup %978  ;;  %816 = vst [vmem:[%s1476_s3 + $0x40] sm:$0xff] %v800_v48  ;;  %988 = vrcp.f32 %v693_v63 }
 0x228   :  { %v981_v43 = vpop.eup %980  ;;  %v801_v28 = vadd.f32 %v785_v4, %v737_v54  ;;  %v754_v39 = vsub.f32 1.0, %v979_v34  ;;  %v738_v58 = vmul.f32 %v979_v34, %v1288_v57 }
 0x229   :  { %v694_v30 = vadd.f32 1.0, %v981_v43 }
 0x22a   :  { %817 = vst [vmem:[%s1476_s3 + $0x48] sm:$0xff] %v801_v28  ;;  %v786_v7 = vmul.f32 %v770_v44, %v754_v39 }
 0x22b   :  { %v983_v18 = vpop.eup %982  ;;  %990 = vrcp.f32 %v694_v30 }
 0x22c   :  { %v985_v56 = vpop.eup %984  ;;  %v802_v45 = vadd.f32 %v786_v7, %v738_v58  ;;  %v755_v36 = vsub.f32 1.0, %v983_v18  ;;  %v739_v6 = vmul.f32 %v983_v18, %v1295_v26 }
 0x22d   :  { %v695_v59 = vadd.f32 1.0, %v985_v56 }
 0x22e   :  { %818 = vst [vmem:[%s1476_s3 + $0x50] sm:$0xff] %v802_v45  ;;  %v787_v53 = vmul.f32 %v771_v11, %v755_v36 }
 0x22f   :  { %v987_v22 = vpop.eup %986  ;;  %992 = vrcp.f32 %v695_v59 }
 0x230   :  { %v803_v57 = vadd.f32 %v787_v53, %v739_v6  ;;  %v756_v17 = vsub.f32 1.0, %v987_v22  ;;  %v740_v25 = vmul.f32 %v987_v22, %v1304_v33  ;;  %v628_v33 = vadd.f32 %v1409_v14, %v1350_v16 }
 0x232   :  { %819 = vst [vmem:[%s1476_s3 + $0x58] sm:$0xff] %v803_v57  ;;  %v788_v3 = vmul.f32 %v772_v40, %v756_v17  ;;  %v775_v1 = vmax.f32 %v628_v33, 0.0 }
 0x234   :  { %v989_v10 = vpop.eup %988  ;;  %v804_v35 = vadd.f32 %v788_v3, %v740_v25 }
 0x235   :  { %v757_v26 = vsub.f32 1.0, %v989_v10  ;;  %v741_v2 = vmul.f32 %v989_v10, %v1311_v13 }
 0x236   :  { %820 = vst [vmem:[%s1476_s3 + $0x60] sm:$0xff] %v804_v35 }
 0x237   :  { %v789_v41 = vmul.f32 %v773_v47, %v757_v26 }
 0x238   :  { %v991_v0 = vpop.eup %990 }
 0x239   :  { %v805_v50 = vadd.f32 %v789_v41, %v741_v2  ;;  %v758_v21 = vsub.f32 1.0, %v991_v0  ;;  %v742_v9 = vmul.f32 %v991_v0, %v1316_v15 }
 0x23b   :  { %821 = vst [vmem:[%s1476_s3 + $0x68] sm:$0xff] %v805_v50  ;;  %v790_v8 = vmul.f32 %v774_v32, %v758_v21 }
 0x23c   :  { %v993_v27 = vpop.eup %992 }
 0x23d   :  { %v806_v51 = vadd.f32 %v790_v8, %v742_v9  ;;  %v759_v52 = vsub.f32 1.0, %v993_v27  ;;  %v743_v13 = vmul.f32 %v993_v27, %v1321_v37 }
 0x23f   :  { %822 = vst [vmem:[%s1476_s3 + $0x70] sm:$0xff] %v806_v51  ;;  %v791_v20 = vmul.f32 %v775_v1, %v759_v52 }
 0x241   :  { %v807_v55 = vadd.f32 %v791_v20, %v743_v13 }
 0x243   :  { %823 = vst [vmem:[%s1476_s3 + $0x78] sm:$0xff] %v807_v55 }
 0x244   :  { %828 = vsyncpa [#allocation3], 1 }

</bundles_post_ra>
